<compile_context>
chip_gen: v7x
topology: tpu7x:2x2x1
jax: 0.10.0
libtpu: 0.0.40
codegen_flags: <defaults>
</compile_context>

<pallas_src>
import numpy as np
import jax
import jax.numpy as jnp
from jax import lax
from jax.experimental import pallas as pl
from jax.experimental.pallas import tpu as pltpu

HIDDEN = 128          # lstm_size == embedding_dim == 128 in the module
GATES = 4 * HIDDEN    # 512


def _round_up(x, m):
    return ((x + m - 1) // m) * m


def decoder_forward(ids, w_emb, w_ih, w_hh, b_ih, b_hh, w_fc, b_fc):
    """LSTM decoder forward over a whole id sequence.

    ids   : int32 [T]
    w_emb : [n_vocab, HIDDEN]
    w_ih  : [GATES, HIDDEN]   (PyTorch weight_ih_l0)
    w_hh  : [GATES, HIDDEN]   (PyTorch weight_hh_l0)
    b_ih, b_hh : [GATES]
    w_fc  : [n_vocab, HIDDEN] (PyTorch fc.weight)
    b_fc  : [n_vocab]
    returns (logits, probs), each [T, n_vocab]
    """
    T = int(ids.shape[0])
    n_vocab = int(w_emb.shape[0])
    T_pad = _round_up(T, 8)
    V_pad = _round_up(n_vocab, 128)

    # --- host-side weight prep -------------------------------------------------
    # Reorder gate columns (i,f,g,o) -> (i,f,o,g): sigmoid over one contiguous
    # (1,384) slice, tanh over one (1,128) slice inside the serial loop.
    perm = jnp.concatenate([jnp.arange(0, 2 * HIDDEN),
                            jnp.arange(3 * HIDDEN, 4 * HIDDEN),
                            jnp.arange(2 * HIDDEN, 3 * HIDDEN)])
    wihT = jnp.transpose(w_ih.astype(jnp.float32))[:, perm]          # (HIDDEN, GATES)
    whhT = jnp.transpose(w_hh.astype(jnp.float32))[:, perm]          # (HIDDEN, GATES)
    bias = (b_ih + b_hh).astype(jnp.float32)[perm].reshape(1, GATES)

    # One-shot batched embedding gather (replaces T per-step row DMAs).
    x_emb = jnp.take(w_emb.astype(jnp.float32), ids.astype(jnp.int32), axis=0)
    x_emb = jnp.pad(x_emb, ((0, T_pad - T), (0, 0)))                  # (T_pad, HIDDEN)

    # fc weights, vocab padded to a multiple of 128 (lane-dense output stores).
    wfcT = jnp.pad(jnp.transpose(w_fc.astype(jnp.float32)),
                   ((0, 0), (0, V_pad - n_vocab)))                    # (HIDDEN, V_pad)
    bfc = jnp.pad(b_fc.astype(jnp.float32), (0, V_pad - n_vocab),
                  constant_values=-1e30).reshape(1, V_pad)            # pad logits ~ -inf

    # --- fused kernel: LSTM recurrence + fc + softmax (single grid step) -------
    def decoder_kernel(x_ref,        # (T_pad, HIDDEN)
                       wih_ref,      # (HIDDEN, GATES)  reordered
                       whh_ref,      # (HIDDEN, GATES)  reordered
                       b_ref,        # (1, GATES)
                       wfc_ref,      # (HIDDEN, V_pad)
                       bfc_ref,      # (1, V_pad)
                       logits_ref,   # out (T_pad, V_pad)
                       probs_ref,    # out (T_pad, V_pad)
                       xg_sc,        # VMEM (T_pad, GATES)
                       hs_sc,        # VMEM (T_pad, HIDDEN)
                       h_sc, c_sc):  # VMEM (1, HIDDEN) each
        # Batched input projection: one well-shaped MXU matmul hoisted out of the
        # serial loop; only the h @ W_hh^T recurrence stays inside it.
        xg_sc[...] = (jnp.dot(x_ref[...], wih_ref[...],
                              preferred_element_type=jnp.float32) + b_ref[...])
        h_sc[...] = jnp.zeros_like(h_sc)          # init_state(1)
        c_sc[...] = jnp.zeros_like(c_sc)
        hs_sc[...] = jnp.zeros_like(hs_sc)        # deterministic pad rows

        def step(t, carry):
            gates = xg_sc[pl.ds(t, 1), :] + jnp.dot(
                h_sc[...], whh_ref[...], preferred_element_type=jnp.float32)  # (1, GATES)
            sg = jax.nn.sigmoid(gates[:, :3 * HIDDEN])                # i | f | o
            g_g = jnp.tanh(gates[:, 3 * HIDDEN:])                     # g
            i_g = sg[:, 0:HIDDEN]
            f_g = sg[:, HIDDEN:2 * HIDDEN]
            o_g = sg[:, 2 * HIDDEN:3 * HIDDEN]
            c_new = f_g * c_sc[...] + i_g * g_g
            h_new = o_g * jnp.tanh(c_new)
            c_sc[...] = c_new
            h_sc[...] = h_new
            hs_sc[pl.ds(t, 1), :] = h_new
            return carry

        lax.fori_loop(0, T, step, 0, unroll=True)

        # Batched fc + softmax over the whole (T_pad, V_pad) slab.
        logits = (jnp.dot(hs_sc[...], wfc_ref[...],
                          preferred_element_type=jnp.float32) + bfc_ref[...])
        logits_ref[...] = logits
        m = jnp.max(logits, axis=-1, keepdims=True)
        e = jnp.exp(logits - m)
        denom = jnp.sum(e, axis=-1, keepdims=True)
        probs_ref[...] = e * pl.reciprocal(denom, approx=False)

    logits_p, probs_p = pl.pallas_call(
        decoder_kernel,
        out_shape=(jax.ShapeDtypeStruct((T_pad, V_pad), jnp.float32),
                   jax.ShapeDtypeStruct((T_pad, V_pad), jnp.float32)),
        grid_spec=pltpu.PrefetchScalarGridSpec(
            num_scalar_prefetch=0,
            grid=(1,),
            in_specs=[
                pl.BlockSpec((T_pad, HIDDEN), lambda i: (0, 0)),
                pl.BlockSpec((HIDDEN, GATES), lambda i: (0, 0)),
                pl.BlockSpec((HIDDEN, GATES), lambda i: (0, 0)),
                pl.BlockSpec((1, GATES), lambda i: (0, 0)),
                pl.BlockSpec((HIDDEN, V_pad), lambda i: (0, 0)),
                pl.BlockSpec((1, V_pad), lambda i: (0, 0)),
            ],
            out_specs=[
                pl.BlockSpec((T_pad, V_pad), lambda i: (0, 0)),
                pl.BlockSpec((T_pad, V_pad), lambda i: (0, 0)),
            ],
            scratch_shapes=[pltpu.VMEM((T_pad, GATES), jnp.float32),
                            pltpu.VMEM((T_pad, HIDDEN), jnp.float32),
                            pltpu.VMEM((1, HIDDEN), jnp.float32),
                            pltpu.VMEM((1, HIDDEN), jnp.float32)]),
        compiler_params=pltpu.CompilerParams(
            dimension_semantics=("arbitrary",)),
    )(x_emb, wihT, whhT, bias, wfcT, bfc)

    return logits_p[:T, :n_vocab], probs_p[:T, :n_vocab]


def decoder_reference(ids, w_emb, w_ih, w_hh, b_ih, b_hh, w_fc, b_fc):
    """Pure-JAX reference (original PyTorch gate order) for validation."""
    wihT = w_ih.T
    whhT = w_hh.T
    b = (b_ih + b_hh)[None, :]
    wfcT = w_fc.T
    bfc = b_fc[None, :]

    def step(carry, idx):
        h, c = carry
        x = w_emb[idx][None, :]
        gates = x @ wihT + h @ whhT + b
        i_g = jax.nn.sigmoid(gates[:, 0 * HIDDEN:1 * HIDDEN])
        f_g = jax.nn.sigmoid(gates[:, 1 * HIDDEN:2 * HIDDEN])
        g_g = jnp.tanh(gates[:, 2 * HIDDEN:3 * HIDDEN])
        o_g = jax.nn.sigmoid(gates[:, 3 * HIDDEN:4 * HIDDEN])
        c = f_g * c + i_g * g_g
        h = o_g * jnp.tanh(c)
        logits = h @ wfcT + bfc
        return (h, c), logits[0]

    h0 = jnp.zeros((1, HIDDEN), jnp.float32)
    c0 = jnp.zeros((1, HIDDEN), jnp.float32)
    _, logits = lax.scan(step, (h0, c0), ids)
    probs = jax.nn.softmax(logits, axis=-1)
    return logits, probs


if __name__ == "__main__":
    n_vocab = 256   # stand-in for len(tokenizer.dataset.uniq_words)
    T = 8           # sequence length produced by tokenizer.tokenize_sentence

    key = jax.random.PRNGKey(0)
    k_emb, k_ih, k_hh, k_bih, k_bhh, k_fc, k_bfc, k_ids = jax.random.split(key, 8)

    w_emb = jax.random.normal(k_emb, (n_vocab, HIDDEN), jnp.float32) * 0.1
    w_ih = jax.random.normal(k_ih, (GATES, HIDDEN), jnp.float32) * 0.1
    w_hh = jax.random.normal(k_hh, (GATES, HIDDEN), jnp.float32) * 0.1
    b_ih = jax.random.normal(k_bih, (GATES,), jnp.float32) * 0.1
    b_hh = jax.random.normal(k_bhh, (GATES,), jnp.float32) * 0.1
    w_fc = jax.random.normal(k_fc, (n_vocab, HIDDEN), jnp.float32) * 0.1
    b_fc = jax.random.normal(k_bfc, (n_vocab,), jnp.float32) * 0.1

    ids = jax.random.randint(k_ids, (T,), 0, n_vocab, jnp.int32)
    mask_array = np.zeros((T,), dtype=bool)  # unmasked: feed the tokenized ids directly

    logits, probs = decoder_forward(ids, w_emb, w_ih, w_hh, b_ih, b_hh, w_fc, b_fc)
    jax.block_until_ready((logits, probs))

    ref_logits, ref_probs = decoder_reference(ids, w_emb, w_ih, w_hh, b_ih, b_hh, w_fc, b_fc)
    np.testing.assert_allclose(np.asarray(logits), np.asarray(ref_logits), rtol=1e-4, atol=1e-4)
    np.testing.assert_allclose(np.asarray(probs), np.asarray(ref_probs), rtol=1e-4, atol=1e-5)

    # Host-side sampling, mirroring np.random.choice(p=softmax(logits)) per step.
    # TODO(synk): the masked-token feedback loop (re-feeding the previously *sampled*
    # word when mask_array[t] is True) and the tokenizer word<->index string mapping
    # are host/data-dependent control flow and are not expressed inside the kernel.
    rng = np.random.default_rng(0)
    p_np = np.asarray(probs)
    sampled = [int(rng.choice(n_vocab, p=p_np[t] / p_np[t].sum())) for t in range(T)]
    assert len(sampled) == T

    print("KERNEL_OK")
</pallas_src>

<mosaic_0001>
module attributes {stable_mosaic.version = 11 : i64} {
  func.func @decoder_kernel(%arg0: i32, %arg1: memref<8x128xf32, #tpu.memory_space<vmem>>, %arg2: memref<128x512xf32, #tpu.memory_space<vmem>>, %arg3: memref<128x512xf32, #tpu.memory_space<vmem>>, %arg4: memref<1x512xf32, #tpu.memory_space<vmem>>, %arg5: memref<128x256xf32, #tpu.memory_space<vmem>>, %arg6: memref<1x256xf32, #tpu.memory_space<vmem>>, %arg7: memref<8x256xf32, #tpu.memory_space<vmem>>, %arg8: memref<8x256xf32, #tpu.memory_space<vmem>>, %arg9: memref<8x512xf32, #tpu.memory_space<vmem>>, %arg10: memref<8x128xf32, #tpu.memory_space<vmem>>, %arg11: memref<1x128xf32, #tpu.memory_space<vmem>>, %arg12: memref<1x128xf32, #tpu.memory_space<vmem>>) attributes {dimension_semantics = [#tpu.dimension_semantics<arbitrary>], iteration_bounds = array<i64: 1>, scalar_prefetch = 0 : i64, scratch_operands = 4 : i64, tpu.core_type = #tpu.core_type<tc>, window_params = [{pipeline_mode = #tpu.pipeline_mode<synchronous>, transform_indices = @transform_0, window_bounds = array<i64: 8, 128>}, {pipeline_mode = #tpu.pipeline_mode<synchronous>, transform_indices = @transform_1, window_bounds = array<i64: 128, 512>}, {pipeline_mode = #tpu.pipeline_mode<synchronous>, transform_indices = @transform_2, window_bounds = array<i64: 128, 512>}, {pipeline_mode = #tpu.pipeline_mode<synchronous>, transform_indices = @transform_3, window_bounds = array<i64: 1, 512>}, {pipeline_mode = #tpu.pipeline_mode<synchronous>, transform_indices = @transform_4, window_bounds = array<i64: 128, 256>}, {pipeline_mode = #tpu.pipeline_mode<synchronous>, transform_indices = @transform_5, window_bounds = array<i64: 1, 256>}, {pipeline_mode = #tpu.pipeline_mode<synchronous>, transform_indices = @transform_6, window_bounds = array<i64: 8, 256>}, {pipeline_mode = #tpu.pipeline_mode<synchronous>, transform_indices = @transform_7, window_bounds = array<i64: 8, 256>}]} {
    %c0 = arith.constant 0 : index
    %c0_0 = arith.constant 0 : index
    %0 = vector.load %arg1[%c0, %c0_0] : memref<8x128xf32, #tpu.memory_space<vmem>>, vector<8x128xf32>
    %c0_1 = arith.constant 0 : index
    %c0_2 = arith.constant 0 : index
    %1 = vector.load %arg2[%c0_1, %c0_2] : memref<128x512xf32, #tpu.memory_space<vmem>>, vector<128x512xf32>
    %cst = arith.constant dense<0.000000e+00> : vector<8x512xf32>
    %2 = tpu.matmul %0, %1, %cst {dimension_numbers = #tpu.dot_dimension_numbers<[1], [0], [0], [1], [0, 0, 1, 1], [], []>} : vector<8x128xf32>, vector<128x512xf32>, vector<8x512xf32> -> vector<8x512xf32>
    %c0_3 = arith.constant 0 : index
    %c0_4 = arith.constant 0 : index
    %3 = vector.load %arg4[%c0_3, %c0_4] : memref<1x512xf32, #tpu.memory_space<vmem>>, vector<1x512xf32>
    %4 = vector.broadcast %3 : vector<1x512xf32> to vector<8x512xf32>
    %5 = arith.addf %2, %4 : vector<8x512xf32>
    %c0_5 = arith.constant 0 : index
    %c0_6 = arith.constant 0 : index
    %6 = vector.load %arg9[%c0_5, %c0_6] : memref<8x512xf32, #tpu.memory_space<vmem>>, vector<8x512xf32>
    tpu.vector_store %arg9[%c0_5, %c0_6], %5 {strides = array<i32>} : memref<8x512xf32, #tpu.memory_space<vmem>>, vector<8x512xf32>,
    %cst_7 = arith.constant 0.000000e+00 : f32
    %7 = vector.broadcast %cst_7 : f32 to vector<1x128xf32>
    %c0_8 = arith.constant 0 : index
    %c0_9 = arith.constant 0 : index
    %8 = vector.load %arg11[%c0_8, %c0_9] : memref<1x128xf32, #tpu.memory_space<vmem>>, vector<1x128xf32>
    tpu.vector_store %arg11[%c0_8, %c0_9], %7 {strides = array<i32>} : memref<1x128xf32, #tpu.memory_space<vmem>>, vector<1x128xf32>,
    %cst_10 = arith.constant 0.000000e+00 : f32
    %9 = vector.broadcast %cst_10 : f32 to vector<1x128xf32>
    %c0_11 = arith.constant 0 : index
    %c0_12 = arith.constant 0 : index
    %10 = vector.load %arg12[%c0_11, %c0_12] : memref<1x128xf32, #tpu.memory_space<vmem>>, vector<1x128xf32>
    tpu.vector_store %arg12[%c0_11, %c0_12], %9 {strides = array<i32>} : memref<1x128xf32, #tpu.memory_space<vmem>>, vector<1x128xf32>,
    %cst_13 = arith.constant 0.000000e+00 : f32
    %11 = vector.broadcast %cst_13 : f32 to vector<8x128xf32>
    %c0_14 = arith.constant 0 : index
    %c0_15 = arith.constant 0 : index
    %12 = vector.load %arg10[%c0_14, %c0_15] : memref<8x128xf32, #tpu.memory_space<vmem>>, vector<8x128xf32>
    tpu.vector_store %arg10[%c0_14, %c0_15], %11 {strides = array<i32>} : memref<8x128xf32, #tpu.memory_space<vmem>>, vector<8x128xf32>,
    %c0_i32 = arith.constant 0 : i32
    %13 = arith.index_cast %c0_i32 : i32 to index
    %c0_16 = arith.constant 0 : index
    %14 = vector.load %arg9[%13, %c0_16] : memref<8x512xf32, #tpu.memory_space<vmem>>, vector<1x512xf32>
    %c0_17 = arith.constant 0 : index
    %c0_18 = arith.constant 0 : index
    %15 = vector.load %arg11[%c0_17, %c0_18] : memref<1x128xf32, #tpu.memory_space<vmem>>, vector<1x128xf32>
    %c0_19 = arith.constant 0 : index
    %c0_20 = arith.constant 0 : index
    %16 = vector.load %arg3[%c0_19, %c0_20] : memref<128x512xf32, #tpu.memory_space<vmem>>, vector<128x512xf32>
    %cst_21 = arith.constant dense<0.000000e+00> : vector<1x512xf32>
    %17 = tpu.matmul %15, %16, %cst_21 {dimension_numbers = #tpu.dot_dimension_numbers<[1], [0], [0], [1], [0, 0, 1, 1], [], []>} : vector<1x128xf32>, vector<128x512xf32>, vector<1x512xf32> -> vector<1x512xf32>
    %18 = arith.addf %14, %17 : vector<1x512xf32>
    %19 = vector.extract_strided_slice %18 {offsets = [0, 0], sizes = [1, 384], strides = [1, 1]} : vector<1x512xf32> to vector<1x384xf32>
    %20 = arith.negf %19 : vector<1x384xf32>
    %21 = math.exp %20 : vector<1x384xf32>
    %cst_22 = arith.constant 1.000000e+00 : f32
    %22 = vector.broadcast %cst_22 : f32 to vector<1x384xf32>
    %23 = arith.addf %22, %21 : vector<1x384xf32>
    %24 = arith.divf %22, %23 : vector<1x384xf32>
    %25 = vector.extract_strided_slice %18 {offsets = [0, 384], sizes = [1, 128], strides = [1, 1]} : vector<1x512xf32> to vector<1x128xf32>
    %26 = math.tanh %25 : vector<1x128xf32>
    %27 = vector.extract_strided_slice %24 {offsets = [0, 0], sizes = [1, 128], strides = [1, 1]} : vector<1x384xf32> to vector<1x128xf32>
    %28 = vector.extract_strided_slice %24 {offsets = [0, 128], sizes = [1, 128], strides = [1, 1]} : vector<1x384xf32> to vector<1x128xf32>
    %29 = vector.extract_strided_slice %24 {offsets = [0, 256], sizes = [1, 128], strides = [1, 1]} : vector<1x384xf32> to vector<1x128xf32>
    %c0_23 = arith.constant 0 : index
    %c0_24 = arith.constant 0 : index
    %30 = vector.load %arg12[%c0_23, %c0_24] : memref<1x128xf32, #tpu.memory_space<vmem>>, vector<1x128xf32>
    %31 = arith.mulf %28, %30 : vector<1x128xf32>
    %32 = arith.mulf %27, %26 : vector<1x128xf32>
    %33 = arith.addf %31, %32 : vector<1x128xf32>
    %34 = math.tanh %33 : vector<1x128xf32>
    %35 = arith.mulf %29, %34 : vector<1x128xf32>
    %c0_25 = arith.constant 0 : index
    %c0_26 = arith.constant 0 : index
    %36 = vector.load %arg12[%c0_25, %c0_26] : memref<1x128xf32, #tpu.memory_space<vmem>>, vector<1x128xf32>
    tpu.vector_store %arg12[%c0_25, %c0_26], %33 {strides = array<i32>} : memref<1x128xf32, #tpu.memory_space<vmem>>, vector<1x128xf32>,
    %c0_27 = arith.constant 0 : index
    %c0_28 = arith.constant 0 : index
    %37 = vector.load %arg11[%c0_27, %c0_28] : memref<1x128xf32, #tpu.memory_space<vmem>>, vector<1x128xf32>
    tpu.vector_store %arg11[%c0_27, %c0_28], %35 {strides = array<i32>} : memref<1x128xf32, #tpu.memory_space<vmem>>, vector<1x128xf32>,
    %38 = arith.index_cast %c0_i32 : i32 to index
    %c0_29 = arith.constant 0 : index
    %39 = vector.load %arg10[%38, %c0_29] : memref<8x128xf32, #tpu.memory_space<vmem>>, vector<1x128xf32>
    tpu.vector_store %arg10[%38, %c0_29], %35 {strides = array<i32>} : memref<8x128xf32, #tpu.memory_space<vmem>>, vector<1x128xf32>,
    %c1_i32 = arith.constant 1 : i32
    %40 = arith.index_cast %c1_i32 : i32 to index
    %c0_30 = arith.constant 0 : index
    %41 = vector.load %arg9[%40, %c0_30] : memref<8x512xf32, #tpu.memory_space<vmem>>, vector<1x512xf32>
    %c0_31 = arith.constant 0 : index
    %c0_32 = arith.constant 0 : index
    %42 = vector.load %arg11[%c0_31, %c0_32] : memref<1x128xf32, #tpu.memory_space<vmem>>, vector<1x128xf32>
    %c0_33 = arith.constant 0 : index
    %c0_34 = arith.constant 0 : index
    %43 = vector.load %arg3[%c0_33, %c0_34] : memref<128x512xf32, #tpu.memory_space<vmem>>, vector<128x512xf32>
    %cst_35 = arith.constant dense<0.000000e+00> : vector<1x512xf32>
    %44 = tpu.matmul %42, %43, %cst_35 {dimension_numbers = #tpu.dot_dimension_numbers<[1], [0], [0], [1], [0, 0, 1, 1], [], []>} : vector<1x128xf32>, vector<128x512xf32>, vector<1x512xf32> -> vector<1x512xf32>
    %45 = arith.addf %41, %44 : vector<1x512xf32>
    %46 = vector.extract_strided_slice %45 {offsets = [0, 0], sizes = [1, 384], strides = [1, 1]} : vector<1x512xf32> to vector<1x384xf32>
    %47 = arith.negf %46 : vector<1x384xf32>
    %48 = math.exp %47 : vector<1x384xf32>
    %cst_36 = arith.constant 1.000000e+00 : f32
    %49 = vector.broadcast %cst_36 : f32 to vector<1x384xf32>
    %50 = arith.addf %49, %48 : vector<1x384xf32>
    %51 = arith.divf %49, %50 : vector<1x384xf32>
    %52 = vector.extract_strided_slice %45 {offsets = [0, 384], sizes = [1, 128], strides = [1, 1]} : vector<1x512xf32> to vector<1x128xf32>
    %53 = math.tanh %52 : vector<1x128xf32>
    %54 = vector.extract_strided_slice %51 {offsets = [0, 0], sizes = [1, 128], strides = [1, 1]} : vector<1x384xf32> to vector<1x128xf32>
    %55 = vector.extract_strided_slice %51 {offsets = [0, 128], sizes = [1, 128], strides = [1, 1]} : vector<1x384xf32> to vector<1x128xf32>
    %56 = vector.extract_strided_slice %51 {offsets = [0, 256], sizes = [1, 128], strides = [1, 1]} : vector<1x384xf32> to vector<1x128xf32>
    %c0_37 = arith.constant 0 : index
    %c0_38 = arith.constant 0 : index
    %57 = vector.load %arg12[%c0_37, %c0_38] : memref<1x128xf32, #tpu.memory_space<vmem>>, vector<1x128xf32>
    %58 = arith.mulf %55, %57 : vector<1x128xf32>
    %59 = arith.mulf %54, %53 : vector<1x128xf32>
    %60 = arith.addf %58, %59 : vector<1x128xf32>
    %61 = math.tanh %60 : vector<1x128xf32>
    %62 = arith.mulf %56, %61 : vector<1x128xf32>
    %c0_39 = arith.constant 0 : index
    %c0_40 = arith.constant 0 : index
    %63 = vector.load %arg12[%c0_39, %c0_40] : memref<1x128xf32, #tpu.memory_space<vmem>>, vector<1x128xf32>
    tpu.vector_store %arg12[%c0_39, %c0_40], %60 {strides = array<i32>} : memref<1x128xf32, #tpu.memory_space<vmem>>, vector<1x128xf32>,
    %c0_41 = arith.constant 0 : index
    %c0_42 = arith.constant 0 : index
    %64 = vector.load %arg11[%c0_41, %c0_42] : memref<1x128xf32, #tpu.memory_space<vmem>>, vector<1x128xf32>
    tpu.vector_store %arg11[%c0_41, %c0_42], %62 {strides = array<i32>} : memref<1x128xf32, #tpu.memory_space<vmem>>, vector<1x128xf32>,
    %65 = arith.index_cast %c1_i32 : i32 to index
    %c0_43 = arith.constant 0 : index
    %66 = vector.load %arg10[%65, %c0_43] : memref<8x128xf32, #tpu.memory_space<vmem>>, vector<1x128xf32>
    tpu.vector_store %arg10[%65, %c0_43], %62 {strides = array<i32>} : memref<8x128xf32, #tpu.memory_space<vmem>>, vector<1x128xf32>,
    %c2_i32 = arith.constant 2 : i32
    %67 = arith.index_cast %c2_i32 : i32 to index
    %c0_44 = arith.constant 0 : index
    %68 = vector.load %arg9[%67, %c0_44] : memref<8x512xf32, #tpu.memory_space<vmem>>, vector<1x512xf32>
    %c0_45 = arith.constant 0 : index
    %c0_46 = arith.constant 0 : index
    %69 = vector.load %arg11[%c0_45, %c0_46] : memref<1x128xf32, #tpu.memory_space<vmem>>, vector<1x128xf32>
    %c0_47 = arith.constant 0 : index
    %c0_48 = arith.constant 0 : index
    %70 = vector.load %arg3[%c0_47, %c0_48] : memref<128x512xf32, #tpu.memory_space<vmem>>, vector<128x512xf32>
    %cst_49 = arith.constant dense<0.000000e+00> : vector<1x512xf32>
    %71 = tpu.matmul %69, %70, %cst_49 {dimension_numbers = #tpu.dot_dimension_numbers<[1], [0], [0], [1], [0, 0, 1, 1], [], []>} : vector<1x128xf32>, vector<128x512xf32>, vector<1x512xf32> -> vector<1x512xf32>
    %72 = arith.addf %68, %71 : vector<1x512xf32>
    %73 = vector.extract_strided_slice %72 {offsets = [0, 0], sizes = [1, 384], strides = [1, 1]} : vector<1x512xf32> to vector<1x384xf32>
    %74 = arith.negf %73 : vector<1x384xf32>
    %75 = math.exp %74 : vector<1x384xf32>
    %cst_50 = arith.constant 1.000000e+00 : f32
    %76 = vector.broadcast %cst_50 : f32 to vector<1x384xf32>
    %77 = arith.addf %76, %75 : vector<1x384xf32>
    %78 = arith.divf %76, %77 : vector<1x384xf32>
    %79 = vector.extract_strided_slice %72 {offsets = [0, 384], sizes = [1, 128], strides = [1, 1]} : vector<1x512xf32> to vector<1x128xf32>
    %80 = math.tanh %79 : vector<1x128xf32>
    %81 = vector.extract_strided_slice %78 {offsets = [0, 0], sizes = [1, 128], strides = [1, 1]} : vector<1x384xf32> to vector<1x128xf32>
    %82 = vector.extract_strided_slice %78 {offsets = [0, 128], sizes = [1, 128], strides = [1, 1]} : vector<1x384xf32> to vector<1x128xf32>
    %83 = vector.extract_strided_slice %78 {offsets = [0, 256], sizes = [1, 128], strides = [1, 1]} : vector<1x384xf32> to vector<1x128xf32>
    %c0_51 = arith.constant 0 : index
    %c0_52 = arith.constant 0 : index
    %84 = vector.load %arg12[%c0_51, %c0_52] : memref<1x128xf32, #tpu.memory_space<vmem>>, vector<1x128xf32>
    %85 = arith.mulf %82, %84 : vector<1x128xf32>
    %86 = arith.mulf %81, %80 : vector<1x128xf32>
    %87 = arith.addf %85, %86 : vector<1x128xf32>
    %88 = math.tanh %87 : vector<1x128xf32>
    %89 = arith.mulf %83, %88 : vector<1x128xf32>
    %c0_53 = arith.constant 0 : index
    %c0_54 = arith.constant 0 : index
    %90 = vector.load %arg12[%c0_53, %c0_54] : memref<1x128xf32, #tpu.memory_space<vmem>>, vector<1x128xf32>
    tpu.vector_store %arg12[%c0_53, %c0_54], %87 {strides = array<i32>} : memref<1x128xf32, #tpu.memory_space<vmem>>, vector<1x128xf32>,
    %c0_55 = arith.constant 0 : index
    %c0_56 = arith.constant 0 : index
    %91 = vector.load %arg11[%c0_55, %c0_56] : memref<1x128xf32, #tpu.memory_space<vmem>>, vector<1x128xf32>
    tpu.vector_store %arg11[%c0_55, %c0_56], %89 {strides = array<i32>} : memref<1x128xf32, #tpu.memory_space<vmem>>, vector<1x128xf32>,
    %92 = arith.index_cast %c2_i32 : i32 to index
    %c0_57 = arith.constant 0 : index
    %93 = vector.load %arg10[%92, %c0_57] : memref<8x128xf32, #tpu.memory_space<vmem>>, vector<1x128xf32>
    tpu.vector_store %arg10[%92, %c0_57], %89 {strides = array<i32>} : memref<8x128xf32, #tpu.memory_space<vmem>>, vector<1x128xf32>,
    %c3_i32 = arith.constant 3 : i32
    %94 = arith.index_cast %c3_i32 : i32 to index
    %c0_58 = arith.constant 0 : index
    %95 = vector.load %arg9[%94, %c0_58] : memref<8x512xf32, #tpu.memory_space<vmem>>, vector<1x512xf32>
    %c0_59 = arith.constant 0 : index
    %c0_60 = arith.constant 0 : index
    %96 = vector.load %arg11[%c0_59, %c0_60] : memref<1x128xf32, #tpu.memory_space<vmem>>, vector<1x128xf32>
    %c0_61 = arith.constant 0 : index
    %c0_62 = arith.constant 0 : index
    %97 = vector.load %arg3[%c0_61, %c0_62] : memref<128x512xf32, #tpu.memory_space<vmem>>, vector<128x512xf32>
    %cst_63 = arith.constant dense<0.000000e+00> : vector<1x512xf32>
    %98 = tpu.matmul %96, %97, %cst_63 {dimension_numbers = #tpu.dot_dimension_numbers<[1], [0], [0], [1], [0, 0, 1, 1], [], []>} : vector<1x128xf32>, vector<128x512xf32>, vector<1x512xf32> -> vector<1x512xf32>
    %99 = arith.addf %95, %98 : vector<1x512xf32>
    %100 = vector.extract_strided_slice %99 {offsets = [0, 0], sizes = [1, 384], strides = [1, 1]} : vector<1x512xf32> to vector<1x384xf32>
    %101 = arith.negf %100 : vector<1x384xf32>
    %102 = math.exp %101 : vector<1x384xf32>
    %cst_64 = arith.constant 1.000000e+00 : f32
    %103 = vector.broadcast %cst_64 : f32 to vector<1x384xf32>
    %104 = arith.addf %103, %102 : vector<1x384xf32>
    %105 = arith.divf %103, %104 : vector<1x384xf32>
    %106 = vector.extract_strided_slice %99 {offsets = [0, 384], sizes = [1, 128], strides = [1, 1]} : vector<1x512xf32> to vector<1x128xf32>
    %107 = math.tanh %106 : vector<1x128xf32>
    %108 = vector.extract_strided_slice %105 {offsets = [0, 0], sizes = [1, 128], strides = [1, 1]} : vector<1x384xf32> to vector<1x128xf32>
    %109 = vector.extract_strided_slice %105 {offsets = [0, 128], sizes = [1, 128], strides = [1, 1]} : vector<1x384xf32> to vector<1x128xf32>
    %110 = vector.extract_strided_slice %105 {offsets = [0, 256], sizes = [1, 128], strides = [1, 1]} : vector<1x384xf32> to vector<1x128xf32>
    %c0_65 = arith.constant 0 : index
    %c0_66 = arith.constant 0 : index
    %111 = vector.load %arg12[%c0_65, %c0_66] : memref<1x128xf32, #tpu.memory_space<vmem>>, vector<1x128xf32>
    %112 = arith.mulf %109, %111 : vector<1x128xf32>
    %113 = arith.mulf %108, %107 : vector<1x128xf32>
    %114 = arith.addf %112, %113 : vector<1x128xf32>
    %115 = math.tanh %114 : vector<1x128xf32>
    %116 = arith.mulf %110, %115 : vector<1x128xf32>
    %c0_67 = arith.constant 0 : index
    %c0_68 = arith.constant 0 : index
    %117 = vector.load %arg12[%c0_67, %c0_68] : memref<1x128xf32, #tpu.memory_space<vmem>>, vector<1x128xf32>
    tpu.vector_store %arg12[%c0_67, %c0_68], %114 {strides = array<i32>} : memref<1x128xf32, #tpu.memory_space<vmem>>, vector<1x128xf32>,
    %c0_69 = arith.constant 0 : index
    %c0_70 = arith.constant 0 : index
    %118 = vector.load %arg11[%c0_69, %c0_70] : memref<1x128xf32, #tpu.memory_space<vmem>>, vector<1x128xf32>
    tpu.vector_store %arg11[%c0_69, %c0_70], %116 {strides = array<i32>} : memref<1x128xf32, #tpu.memory_space<vmem>>, vector<1x128xf32>,
    %119 = arith.index_cast %c3_i32 : i32 to index
    %c0_71 = arith.constant 0 : index
    %120 = vector.load %arg10[%119, %c0_71] : memref<8x128xf32, #tpu.memory_space<vmem>>, vector<1x128xf32>
    tpu.vector_store %arg10[%119, %c0_71], %116 {strides = array<i32>} : memref<8x128xf32, #tpu.memory_space<vmem>>, vector<1x128xf32>,
    %c4_i32 = arith.constant 4 : i32
    %121 = arith.index_cast %c4_i32 : i32 to index
    %c0_72 = arith.constant 0 : index
    %122 = vector.load %arg9[%121, %c0_72] : memref<8x512xf32, #tpu.memory_space<vmem>>, vector<1x512xf32>
    %c0_73 = arith.constant 0 : index
    %c0_74 = arith.constant 0 : index
    %123 = vector.load %arg11[%c0_73, %c0_74] : memref<1x128xf32, #tpu.memory_space<vmem>>, vector<1x128xf32>
    %c0_75 = arith.constant 0 : index
    %c0_76 = arith.constant 0 : index
    %124 = vector.load %arg3[%c0_75, %c0_76] : memref<128x512xf32, #tpu.memory_space<vmem>>, vector<128x512xf32>
    %cst_77 = arith.constant dense<0.000000e+00> : vector<1x512xf32>
    %125 = tpu.matmul %123, %124, %cst_77 {dimension_numbers = #tpu.dot_dimension_numbers<[1], [0], [0], [1], [0, 0, 1, 1], [], []>} : vector<1x128xf32>, vector<128x512xf32>, vector<1x512xf32> -> vector<1x512xf32>
    %126 = arith.addf %122, %125 : vector<1x512xf32>
    %127 = vector.extract_strided_slice %126 {offsets = [0, 0], sizes = [1, 384], strides = [1, 1]} : vector<1x512xf32> to vector<1x384xf32>
    %128 = arith.negf %127 : vector<1x384xf32>
    %129 = math.exp %128 : vector<1x384xf32>
    %cst_78 = arith.constant 1.000000e+00 : f32
    %130 = vector.broadcast %cst_78 : f32 to vector<1x384xf32>
    %131 = arith.addf %130, %129 : vector<1x384xf32>
    %132 = arith.divf %130, %131 : vector<1x384xf32>
    %133 = vector.extract_strided_slice %126 {offsets = [0, 384], sizes = [1, 128], strides = [1, 1]} : vector<1x512xf32> to vector<1x128xf32>
    %134 = math.tanh %133 : vector<1x128xf32>
    %135 = vector.extract_strided_slice %132 {offsets = [0, 0], sizes = [1, 128], strides = [1, 1]} : vector<1x384xf32> to vector<1x128xf32>
    %136 = vector.extract_strided_slice %132 {offsets = [0, 128], sizes = [1, 128], strides = [1, 1]} : vector<1x384xf32> to vector<1x128xf32>
    %137 = vector.extract_strided_slice %132 {offsets = [0, 256], sizes = [1, 128], strides = [1, 1]} : vector<1x384xf32> to vector<1x128xf32>
    %c0_79 = arith.constant 0 : index
    %c0_80 = arith.constant 0 : index
    %138 = vector.load %arg12[%c0_79, %c0_80] : memref<1x128xf32, #tpu.memory_space<vmem>>, vector<1x128xf32>
    %139 = arith.mulf %136, %138 : vector<1x128xf32>
    %140 = arith.mulf %135, %134 : vector<1x128xf32>
    %141 = arith.addf %139, %140 : vector<1x128xf32>
    %142 = math.tanh %141 : vector<1x128xf32>
    %143 = arith.mulf %137, %142 : vector<1x128xf32>
    %c0_81 = arith.constant 0 : index
    %c0_82 = arith.constant 0 : index
    %144 = vector.load %arg12[%c0_81, %c0_82] : memref<1x128xf32, #tpu.memory_space<vmem>>, vector<1x128xf32>
    tpu.vector_store %arg12[%c0_81, %c0_82], %141 {strides = array<i32>} : memref<1x128xf32, #tpu.memory_space<vmem>>, vector<1x128xf32>,
    %c0_83 = arith.constant 0 : index
    %c0_84 = arith.constant 0 : index
    %145 = vector.load %arg11[%c0_83, %c0_84] : memref<1x128xf32, #tpu.memory_space<vmem>>, vector<1x128xf32>
    tpu.vector_store %arg11[%c0_83, %c0_84], %143 {strides = array<i32>} : memref<1x128xf32, #tpu.memory_space<vmem>>, vector<1x128xf32>,
    %146 = arith.index_cast %c4_i32 : i32 to index
    %c0_85 = arith.constant 0 : index
    %147 = vector.load %arg10[%146, %c0_85] : memref<8x128xf32, #tpu.memory_space<vmem>>, vector<1x128xf32>
    tpu.vector_store %arg10[%146, %c0_85], %143 {strides = array<i32>} : memref<8x128xf32, #tpu.memory_space<vmem>>, vector<1x128xf32>,
    %c5_i32 = arith.constant 5 : i32
    %148 = arith.index_cast %c5_i32 : i32 to index
    %c0_86 = arith.constant 0 : index
    %149 = vector.load %arg9[%148, %c0_86] : memref<8x512xf32, #tpu.memory_space<vmem>>, vector<1x512xf32>
    %c0_87 = arith.constant 0 : index
    %c0_88 = arith.constant 0 : index
    %150 = vector.load %arg11[%c0_87, %c0_88] : memref<1x128xf32, #tpu.memory_space<vmem>>, vector<1x128xf32>
    %c0_89 = arith.constant 0 : index
    %c0_90 = arith.constant 0 : index
    %151 = vector.load %arg3[%c0_89, %c0_90] : memref<128x512xf32, #tpu.memory_space<vmem>>, vector<128x512xf32>
    %cst_91 = arith.constant dense<0.000000e+00> : vector<1x512xf32>
    %152 = tpu.matmul %150, %151, %cst_91 {dimension_numbers = #tpu.dot_dimension_numbers<[1], [0], [0], [1], [0, 0, 1, 1], [], []>} : vector<1x128xf32>, vector<128x512xf32>, vector<1x512xf32> -> vector<1x512xf32>
    %153 = arith.addf %149, %152 : vector<1x512xf32>
    %154 = vector.extract_strided_slice %153 {offsets = [0, 0], sizes = [1, 384], strides = [1, 1]} : vector<1x512xf32> to vector<1x384xf32>
    %155 = arith.negf %154 : vector<1x384xf32>
    %156 = math.exp %155 : vector<1x384xf32>
    %cst_92 = arith.constant 1.000000e+00 : f32
    %157 = vector.broadcast %cst_92 : f32 to vector<1x384xf32>
    %158 = arith.addf %157, %156 : vector<1x384xf32>
    %159 = arith.divf %157, %158 : vector<1x384xf32>
    %160 = vector.extract_strided_slice %153 {offsets = [0, 384], sizes = [1, 128], strides = [1, 1]} : vector<1x512xf32> to vector<1x128xf32>
    %161 = math.tanh %160 : vector<1x128xf32>
    %162 = vector.extract_strided_slice %159 {offsets = [0, 0], sizes = [1, 128], strides = [1, 1]} : vector<1x384xf32> to vector<1x128xf32>
    %163 = vector.extract_strided_slice %159 {offsets = [0, 128], sizes = [1, 128], strides = [1, 1]} : vector<1x384xf32> to vector<1x128xf32>
    %164 = vector.extract_strided_slice %159 {offsets = [0, 256], sizes = [1, 128], strides = [1, 1]} : vector<1x384xf32> to vector<1x128xf32>
    %c0_93 = arith.constant 0 : index
    %c0_94 = arith.constant 0 : index
    %165 = vector.load %arg12[%c0_93, %c0_94] : memref<1x128xf32, #tpu.memory_space<vmem>>, vector<1x128xf32>
    %166 = arith.mulf %163, %165 : vector<1x128xf32>
    %167 = arith.mulf %162, %161 : vector<1x128xf32>
    %168 = arith.addf %166, %167 : vector<1x128xf32>
    %169 = math.tanh %168 : vector<1x128xf32>
    %170 = arith.mulf %164, %169 : vector<1x128xf32>
    %c0_95 = arith.constant 0 : index
    %c0_96 = arith.constant 0 : index
    %171 = vector.load %arg12[%c0_95, %c0_96] : memref<1x128xf32, #tpu.memory_space<vmem>>, vector<1x128xf32>
    tpu.vector_store %arg12[%c0_95, %c0_96], %168 {strides = array<i32>} : memref<1x128xf32, #tpu.memory_space<vmem>>, vector<1x128xf32>,
    %c0_97 = arith.constant 0 : index
    %c0_98 = arith.constant 0 : index
    %172 = vector.load %arg11[%c0_97, %c0_98] : memref<1x128xf32, #tpu.memory_space<vmem>>, vector<1x128xf32>
    tpu.vector_store %arg11[%c0_97, %c0_98], %170 {strides = array<i32>} : memref<1x128xf32, #tpu.memory_space<vmem>>, vector<1x128xf32>,
    %173 = arith.index_cast %c5_i32 : i32 to index
    %c0_99 = arith.constant 0 : index
    %174 = vector.load %arg10[%173, %c0_99] : memref<8x128xf32, #tpu.memory_space<vmem>>, vector<1x128xf32>
    tpu.vector_store %arg10[%173, %c0_99], %170 {strides = array<i32>} : memref<8x128xf32, #tpu.memory_space<vmem>>, vector<1x128xf32>,
    %c6_i32 = arith.constant 6 : i32
    %175 = arith.index_cast %c6_i32 : i32 to index
    %c0_100 = arith.constant 0 : index
    %176 = vector.load %arg9[%175, %c0_100] : memref<8x512xf32, #tpu.memory_space<vmem>>, vector<1x512xf32>
    %c0_101 = arith.constant 0 : index
    %c0_102 = arith.constant 0 : index
    %177 = vector.load %arg11[%c0_101, %c0_102] : memref<1x128xf32, #tpu.memory_space<vmem>>, vector<1x128xf32>
    %c0_103 = arith.constant 0 : index
    %c0_104 = arith.constant 0 : index
    %178 = vector.load %arg3[%c0_103, %c0_104] : memref<128x512xf32, #tpu.memory_space<vmem>>, vector<128x512xf32>
    %cst_105 = arith.constant dense<0.000000e+00> : vector<1x512xf32>
    %179 = tpu.matmul %177, %178, %cst_105 {dimension_numbers = #tpu.dot_dimension_numbers<[1], [0], [0], [1], [0, 0, 1, 1], [], []>} : vector<1x128xf32>, vector<128x512xf32>, vector<1x512xf32> -> vector<1x512xf32>
    %180 = arith.addf %176, %179 : vector<1x512xf32>
    %181 = vector.extract_strided_slice %180 {offsets = [0, 0], sizes = [1, 384], strides = [1, 1]} : vector<1x512xf32> to vector<1x384xf32>
    %182 = arith.negf %181 : vector<1x384xf32>
    %183 = math.exp %182 : vector<1x384xf32>
    %cst_106 = arith.constant 1.000000e+00 : f32
    %184 = vector.broadcast %cst_106 : f32 to vector<1x384xf32>
    %185 = arith.addf %184, %183 : vector<1x384xf32>
    %186 = arith.divf %184, %185 : vector<1x384xf32>
    %187 = vector.extract_strided_slice %180 {offsets = [0, 384], sizes = [1, 128], strides = [1, 1]} : vector<1x512xf32> to vector<1x128xf32>
    %188 = math.tanh %187 : vector<1x128xf32>
    %189 = vector.extract_strided_slice %186 {offsets = [0, 0], sizes = [1, 128], strides = [1, 1]} : vector<1x384xf32> to vector<1x128xf32>
    %190 = vector.extract_strided_slice %186 {offsets = [0, 128], sizes = [1, 128], strides = [1, 1]} : vector<1x384xf32> to vector<1x128xf32>
    %191 = vector.extract_strided_slice %186 {offsets = [0, 256], sizes = [1, 128], strides = [1, 1]} : vector<1x384xf32> to vector<1x128xf32>
    %c0_107 = arith.constant 0 : index
    %c0_108 = arith.constant 0 : index
    %192 = vector.load %arg12[%c0_107, %c0_108] : memref<1x128xf32, #tpu.memory_space<vmem>>, vector<1x128xf32>
    %193 = arith.mulf %190, %192 : vector<1x128xf32>
    %194 = arith.mulf %189, %188 : vector<1x128xf32>
    %195 = arith.addf %193, %194 : vector<1x128xf32>
    %196 = math.tanh %195 : vector<1x128xf32>
    %197 = arith.mulf %191, %196 : vector<1x128xf32>
    %c0_109 = arith.constant 0 : index
    %c0_110 = arith.constant 0 : index
    %198 = vector.load %arg12[%c0_109, %c0_110] : memref<1x128xf32, #tpu.memory_space<vmem>>, vector<1x128xf32>
    tpu.vector_store %arg12[%c0_109, %c0_110], %195 {strides = array<i32>} : memref<1x128xf32, #tpu.memory_space<vmem>>, vector<1x128xf32>,
    %c0_111 = arith.constant 0 : index
    %c0_112 = arith.constant 0 : index
    %199 = vector.load %arg11[%c0_111, %c0_112] : memref<1x128xf32, #tpu.memory_space<vmem>>, vector<1x128xf32>
    tpu.vector_store %arg11[%c0_111, %c0_112], %197 {strides = array<i32>} : memref<1x128xf32, #tpu.memory_space<vmem>>, vector<1x128xf32>,
    %200 = arith.index_cast %c6_i32 : i32 to index
    %c0_113 = arith.constant 0 : index
    %201 = vector.load %arg10[%200, %c0_113] : memref<8x128xf32, #tpu.memory_space<vmem>>, vector<1x128xf32>
    tpu.vector_store %arg10[%200, %c0_113], %197 {strides = array<i32>} : memref<8x128xf32, #tpu.memory_space<vmem>>, vector<1x128xf32>,
    %c7_i32 = arith.constant 7 : i32
    %202 = arith.index_cast %c7_i32 : i32 to index
    %c0_114 = arith.constant 0 : index
    %203 = vector.load %arg9[%202, %c0_114] : memref<8x512xf32, #tpu.memory_space<vmem>>, vector<1x512xf32>
    %c0_115 = arith.constant 0 : index
    %c0_116 = arith.constant 0 : index
    %204 = vector.load %arg11[%c0_115, %c0_116] : memref<1x128xf32, #tpu.memory_space<vmem>>, vector<1x128xf32>
    %c0_117 = arith.constant 0 : index
    %c0_118 = arith.constant 0 : index
    %205 = vector.load %arg3[%c0_117, %c0_118] : memref<128x512xf32, #tpu.memory_space<vmem>>, vector<128x512xf32>
    %cst_119 = arith.constant dense<0.000000e+00> : vector<1x512xf32>
    %206 = tpu.matmul %204, %205, %cst_119 {dimension_numbers = #tpu.dot_dimension_numbers<[1], [0], [0], [1], [0, 0, 1, 1], [], []>} : vector<1x128xf32>, vector<128x512xf32>, vector<1x512xf32> -> vector<1x512xf32>
    %207 = arith.addf %203, %206 : vector<1x512xf32>
    %208 = vector.extract_strided_slice %207 {offsets = [0, 0], sizes = [1, 384], strides = [1, 1]} : vector<1x512xf32> to vector<1x384xf32>
    %209 = arith.negf %208 : vector<1x384xf32>
    %210 = math.exp %209 : vector<1x384xf32>
    %cst_120 = arith.constant 1.000000e+00 : f32
    %211 = vector.broadcast %cst_120 : f32 to vector<1x384xf32>
    %212 = arith.addf %211, %210 : vector<1x384xf32>
    %213 = arith.divf %211, %212 : vector<1x384xf32>
    %214 = vector.extract_strided_slice %207 {offsets = [0, 384], sizes = [1, 128], strides = [1, 1]} : vector<1x512xf32> to vector<1x128xf32>
    %215 = math.tanh %214 : vector<1x128xf32>
    %216 = vector.extract_strided_slice %213 {offsets = [0, 0], sizes = [1, 128], strides = [1, 1]} : vector<1x384xf32> to vector<1x128xf32>
    %217 = vector.extract_strided_slice %213 {offsets = [0, 128], sizes = [1, 128], strides = [1, 1]} : vector<1x384xf32> to vector<1x128xf32>
    %218 = vector.extract_strided_slice %213 {offsets = [0, 256], sizes = [1, 128], strides = [1, 1]} : vector<1x384xf32> to vector<1x128xf32>
    %c0_121 = arith.constant 0 : index
    %c0_122 = arith.constant 0 : index
    %219 = vector.load %arg12[%c0_121, %c0_122] : memref<1x128xf32, #tpu.memory_space<vmem>>, vector<1x128xf32>
    %220 = arith.mulf %217, %219 : vector<1x128xf32>
    %221 = arith.mulf %216, %215 : vector<1x128xf32>
    %222 = arith.addf %220, %221 : vector<1x128xf32>
    %223 = math.tanh %222 : vector<1x128xf32>
    %224 = arith.mulf %218, %223 : vector<1x128xf32>
    %c0_123 = arith.constant 0 : index
    %c0_124 = arith.constant 0 : index
    %225 = vector.load %arg12[%c0_123, %c0_124] : memref<1x128xf32, #tpu.memory_space<vmem>>, vector<1x128xf32>
    tpu.vector_store %arg12[%c0_123, %c0_124], %222 {strides = array<i32>} : memref<1x128xf32, #tpu.memory_space<vmem>>, vector<1x128xf32>,
    %c0_125 = arith.constant 0 : index
    %c0_126 = arith.constant 0 : index
    %226 = vector.load %arg11[%c0_125, %c0_126] : memref<1x128xf32, #tpu.memory_space<vmem>>, vector<1x128xf32>
    tpu.vector_store %arg11[%c0_125, %c0_126], %224 {strides = array<i32>} : memref<1x128xf32, #tpu.memory_space<vmem>>, vector<1x128xf32>,
    %227 = arith.index_cast %c7_i32 : i32 to index
    %c0_127 = arith.constant 0 : index
    %228 = vector.load %arg10[%227, %c0_127] : memref<8x128xf32, #tpu.memory_space<vmem>>, vector<1x128xf32>
    tpu.vector_store %arg10[%227, %c0_127], %224 {strides = array<i32>} : memref<8x128xf32, #tpu.memory_space<vmem>>, vector<1x128xf32>,
    %c8_i32 = arith.constant 8 : i32
    %c0_128 = arith.constant 0 : index
    %c0_129 = arith.constant 0 : index
    %229 = vector.load %arg10[%c0_128, %c0_129] : memref<8x128xf32, #tpu.memory_space<vmem>>, vector<8x128xf32>
    %c0_130 = arith.constant 0 : index
    %c0_131 = arith.constant 0 : index
    %230 = vector.load %arg5[%c0_130, %c0_131] : memref<128x256xf32, #tpu.memory_space<vmem>>, vector<128x256xf32>
    %cst_132 = arith.constant dense<0.000000e+00> : vector<8x256xf32>
    %231 = tpu.matmul %229, %230, %cst_132 {dimension_numbers = #tpu.dot_dimension_numbers<[1], [0], [0], [1], [0, 0, 1, 1], [], []>} : vector<8x128xf32>, vector<128x256xf32>, vector<8x256xf32> -> vector<8x256xf32>
    %c0_133 = arith.constant 0 : index
    %c0_134 = arith.constant 0 : index
    %232 = vector.load %arg6[%c0_133, %c0_134] : memref<1x256xf32, #tpu.memory_space<vmem>>, vector<1x256xf32>
    %233 = vector.broadcast %232 : vector<1x256xf32> to vector<8x256xf32>
    %234 = arith.addf %231, %233 : vector<8x256xf32>
    %c0_135 = arith.constant 0 : index
    %c0_136 = arith.constant 0 : index
    %235 = vector.load %arg7[%c0_135, %c0_136] : memref<8x256xf32, #tpu.memory_space<vmem>>, vector<8x256xf32>
    tpu.vector_store %arg7[%c0_135, %c0_136], %234 {strides = array<i32>} : memref<8x256xf32, #tpu.memory_space<vmem>>, vector<8x256xf32>,
    %cst_137 = arith.constant dense<0xFF800000> : vector<8xf32>
    %236 = vector.multi_reduction <maximumf>, %234, %cst_137 [1] : vector<8x256xf32> to vector<8xf32>
    %237 = vector.shape_cast %236 : vector<8xf32> to vector<8x1xf32>
    %238 = vector.broadcast %237 : vector<8x1xf32> to vector<8x256xf32>
    %239 = arith.subf %234, %238 : vector<8x256xf32>
    %240 = math.exp %239 : vector<8x256xf32>
    %cst_138 = arith.constant dense<0.000000e+00> : vector<8xf32>
    %241 = vector.multi_reduction <add>, %240, %cst_138 [1] : vector<8x256xf32> to vector<8xf32>
    %242 = vector.shape_cast %241 : vector<8xf32> to vector<8x1xf32>
    %243 = tpu.reciprocal %242 : vector<8x1xf32> -> vector<8x1xf32>
    %244 = vector.broadcast %243 : vector<8x1xf32> to vector<8x256xf32>
    %245 = arith.mulf %240, %244 : vector<8x256xf32>
    %c0_139 = arith.constant 0 : index
    %c0_140 = arith.constant 0 : index
    %246 = vector.load %arg8[%c0_139, %c0_140] : memref<8x256xf32, #tpu.memory_space<vmem>>, vector<8x256xf32>
    tpu.vector_store %arg8[%c0_139, %c0_140], %245 {strides = array<i32>} : memref<8x256xf32, #tpu.memory_space<vmem>>, vector<8x256xf32>,
    return
  }
  func.func @transform_0(%arg0: i32) -> (i32, i32) {
    %c0_i32 = arith.constant 0 : i32
    %c0_i32_0 = arith.constant 0 : i32
    %c0_i32_1 = arith.constant 0 : i32
    return %c0_i32, %c0_i32_0 : i32, i32
  }
  func.func @transform_1(%arg0: i32) -> (i32, i32) {
    %c0_i32 = arith.constant 0 : i32
    %c0_i32_0 = arith.constant 0 : i32
    %c0_i32_1 = arith.constant 0 : i32
    return %c0_i32, %c0_i32_0 : i32, i32
  }
  func.func @transform_2(%arg0: i32) -> (i32, i32) {
    %c0_i32 = arith.constant 0 : i32
    %c0_i32_0 = arith.constant 0 : i32
    %c0_i32_1 = arith.constant 0 : i32
    return %c0_i32, %c0_i32_0 : i32, i32
  }
  func.func @transform_3(%arg0: i32) -> (i32, i32) {
    %c0_i32 = arith.constant 0 : i32
    %c0_i32_0 = arith.constant 0 : i32
    %c0_i32_1 = arith.constant 0 : i32
    return %c0_i32, %c0_i32_0 : i32, i32
  }
  func.func @transform_4(%arg0: i32) -> (i32, i32) {
    %c0_i32 = arith.constant 0 : i32
    %c0_i32_0 = arith.constant 0 : i32
    %c0_i32_1 = arith.constant 0 : i32
    return %c0_i32, %c0_i32_0 : i32, i32
  }
  func.func @transform_5(%arg0: i32) -> (i32, i32) {
    %c0_i32 = arith.constant 0 : i32
    %c0_i32_0 = arith.constant 0 : i32
    %c0_i32_1 = arith.constant 0 : i32
    return %c0_i32, %c0_i32_0 : i32, i32
  }
  func.func @transform_6(%arg0: i32) -> (i32, i32) {
    %c0_i32 = arith.constant 0 : i32
    %c0_i32_0 = arith.constant 0 : i32
    %c0_i32_1 = arith.constant 0 : i32
    return %c0_i32, %c0_i32_0 : i32, i32
  }
  func.func @transform_7(%arg0: i32) -> (i32, i32) {
    %c0_i32 = arith.constant 0 : i32
    %c0_i32_0 = arith.constant 0 : i32
    %c0_i32_1 = arith.constant 0 : i32
    return %c0_i32, %c0_i32_0 : i32, i32
  }
}

</mosaic_0001>

<bundles_post_ra>
// kernel: tpu_custom_call.1
= control target key start
LH: loop header
LB: loop body
LE: loop exit
PB: predicated region body
PF: predicated region fallthrough
CT: control target
= control target key end

     0   :  { %13 = vsyncpa [#allocation7], 0  ;;  %s3976_s0 = inlined_call_operand.hbm [shape: f32[8,128], index: 0, kind: input, shape index: {}]   ;;  %s3977_s1 = inlined_call_operand.hbm [shape: f32[128,512], index: 1, kind: input, shape index: {}]   ;;  %s3978_s2 = inlined_call_operand.hbm [shape: f32[128,512], index: 2, kind: input, shape index: {}]   ;;  %s3979_s3 = inlined_call_operand.vmem [shape: f32[1,512], index: 3, kind: input, shape index: {}]   ;;  %s3980_s4 = inlined_call_operand.hbm [shape: f32[128,256], index: 4, kind: input, shape index: {}]   ;;  %s3981_s5 = inlined_call_operand.vmem [shape: f32[1,256], index: 5, kind: input, shape index: {}]   ;;  %s3982_s6 = inlined_call_operand.hbm [shape: f32[8,256], index: 6, kind: output, shape index: {0}]   ;;  %s3983_s7 = inlined_call_operand.hbm [shape: f32[8,256], index: 7, kind: output, shape index: {1}]  }
   0x1   :  { %14 = vsyncpa [#allocation10], 0 }
   0x2   :  { %15 = vsyncpa [#allocation13], 0 }
   0x3   :  { %16 = vsyncpa [#allocation8], 0 }
   0x4   :  { %17 = vsyncpa [#allocation16], 0  ;;  %s3425_s24 = smov [#allocation9]   ;;  %s3283_s28 = scalar_lea.hbm %s3977_s1, 8192 }
   0x5   :  { %s33_s25 = sshll.u32 %s3425_s24, 4  ;;  %p3284_p0 = scmp.ne.s32.totalorder %s3977_s1, %s3283_s28  ;;  %s34_s25 = int_to_ptr.vmem [resolvable:$true] %s33_s25 }
   0x6   :  { %p3287_p1 = scmp.lt.u32.totalorder %s3283_s28, %s3977_s1 }
   0x8   :  { %p3289_p2 = pnand %p3287_p1, %p3284_p0 }
   0xa   :  { %3292 = shalt.err (!%p3289_p2)
}
   0xb   :  { %s3293_s10 = scalar_lea.vmem %s34_s25, 8192  ;;  %p3298_p4 = scmp.lt.s32.totalorder %s34_s25, %s34_s25 }
   0xc   :  { %p3294_p3 = scmp.ne.s32.totalorder %s34_s25, %s3293_s10  ;;  %p3299_p5 = scmp.lt.s32.totalorder %s3293_s10, %s3293_s10 }
   0xe   :  { %p3300_p6 = por %p3299_p5, %p3298_p4 }
  0x10   :  { %p3301_p7 = pnand %p3300_p6, %p3294_p3 }
  0x12   :  { %3304 = shalt.err (!%p3301_p7)
}
  0x13   :  { %s3426_s11 = smov 512   ;;  %s3427_s12 = smov 32  }
  0x14   :  { %39 = dma.hbm_to_vmem [thread:$0]  %s3977_s1, 8192, %s34_s25, [#allocation10], %s3426_s11, %s3426_s11, %s3427_s12  }
  0x15   :  { %s3428_s15 = smov [#allocation6]   ;;  %s3429_s17 = smov [#allocation11]  }
  0x16   :  { %s24_s16 = sshll.u32 %s3428_s15, 4  ;;  %s45_s18 = sshll.u32 %s3429_s17, 4  ;;  %s25_s16 = int_to_ptr.vmem [resolvable:$true] %s24_s16  ;;  %s46_s18 = int_to_ptr.vmem [resolvable:$true] %s45_s18 }
  0x17   :  { %s3305_s21 = scalar_lea.hbm %s3976_s0, 128 }
  0x18   :  { %p3306_p8 = scmp.ne.s32.totalorder %s3976_s0, %s3305_s21  ;;  %p3309_p9 = scmp.lt.u32.totalorder %s3305_s21, %s3976_s0 }
  0x1a   :  { %p3311_p10 = pnand %p3309_p9, %p3306_p8 }
  0x1c   :  { %3314 = shalt.err (!%p3311_p10)
}
  0x1d   :  { %s3315_s1 = scalar_lea.vmem %s25_s16, 128  ;;  %p3320_p12 = scmp.lt.s32.totalorder %s25_s16, %s25_s16 }
  0x1e   :  { %p3316_p11 = scmp.ne.s32.totalorder %s25_s16, %s3315_s1  ;;  %p3321_p13 = scmp.lt.s32.totalorder %s3315_s1, %s3315_s1 }
  0x20   :  { %p3322_p0 = por %p3321_p13, %p3320_p12 }
  0x22   :  { %p3323_p1 = pnand %p3322_p0, %p3316_p11 }
  0x24   :  { %3326 = shalt.err (!%p3323_p1)
}
  0x25   :  { %27 = dma.hbm_to_vmem [thread:$0]  %s3976_s0, 128, %s25_s16, [#allocation7]  }
  0x26   :  { %s3327_s30 = scalar_lea.hbm %s3978_s2, 8192 }
  0x27   :  { %p3328_p2 = scmp.ne.s32.totalorder %s3978_s2, %s3327_s30  ;;  %p3331_p3 = scmp.lt.u32.totalorder %s3327_s30, %s3978_s2 }
  0x29   :  { %p3333_p4 = pnand %p3331_p3, %p3328_p2 }
  0x2b   :  { %3336 = shalt.err (!%p3333_p4)
}
  0x2c   :  { %s3337_s14 = scalar_lea.vmem %s46_s18, 8192  ;;  %p3342_p6 = scmp.lt.s32.totalorder %s46_s18, %s46_s18 }
  0x2d   :  { %p3338_p5 = scmp.ne.s32.totalorder %s46_s18, %s3337_s14  ;;  %p3343_p7 = scmp.lt.s32.totalorder %s3337_s14, %s3337_s14 }
  0x2f   :  { %p3344_p8 = por %p3343_p7, %p3342_p6 }
  0x31   :  { %p3345_p9 = pnand %p3344_p8, %p3338_p5 }
  0x33   :  { %3348 = shalt.err (!%p3345_p9)
}
  0x34   :  { %51 = dma.hbm_to_vmem [thread:$0]  %s3978_s2, 8192, %s46_s18, [#allocation10], %s3426_s11, %s3426_s11, %s3427_s12  }
  0x35   :  { %s3430_s16 = smov [#allocation12]   ;;  %s3349_s21 = scalar_lea.hbm %s3980_s4, 4096 }
  0x36   :  { %s59_s17 = sshll.u32 %s3430_s16, 4  ;;  %p3350_p10 = scmp.ne.s32.totalorder %s3980_s4, %s3349_s21  ;;  %s60_s17 = int_to_ptr.vmem [resolvable:$true] %s59_s17 }
  0x37   :  { %p3353_p11 = scmp.lt.u32.totalorder %s3349_s21, %s3980_s4 }
  0x39   :  { %p3355_p12 = pnand %p3353_p11, %p3350_p10 }
  0x3b   :  { %3358 = shalt.err (!%p3355_p12)
}
  0x3c   :  { %s3359_s1 = scalar_lea.vmem %s60_s17, 4096  ;;  %p3364_p0 = scmp.lt.s32.totalorder %s60_s17, %s60_s17 }
  0x3d   :  { %p3360_p13 = scmp.ne.s32.totalorder %s60_s17, %s3359_s1  ;;  %p3365_p1 = scmp.lt.s32.totalorder %s3359_s1, %s3359_s1 }
  0x3f   :  { %p3366_p2 = por %p3365_p1, %p3364_p0 }
  0x41   :  { %p3367_p3 = pnand %p3366_p2, %p3360_p13 }
  0x43   :  { %3370 = shalt.err (!%p3367_p3)
}
  0x44   :  { %s3431_s2 = smov 256   ;;  %s3432_s11 = smov 16  }
  0x45   :  { %65 = dma.hbm_to_vmem [thread:$0]  %s3980_s4, 4096, %s60_s17, [#allocation13], %s3431_s2, %s3431_s2, %s3432_s11  }
  0x46   :  { %3415 = dma.done.wait [#allocation7], 128  }
  0x47   :  { %3416 = vsyncadd [#allocation7], 4294967168 }
  0x48   :  { %3417 = dma.done.wait [#allocation10], 16384  }
  0x49   :  { %3418 = vsyncadd [#allocation10], 4294950912 }
  0x4a   :  { %3419 = dma.done.wait [#allocation13], 4096  }
  0x4b   :  { %3420 = vsyncadd [#allocation13], 4294963200  ;;  %v3433_v0 = vmov 0.0   ;;  %v82_v1 = vld [vmem:[#allocation9 + $0x8] sm:$0xff]  ;;  %v84_v3 = vld [vmem:[#allocation9 + $0x18] sm:$0xff] }
  0x4c   :  { %231 = vmatprep.mubr.f32.mxu0 %v3433_v0  ;;  %313 = vst [vmem:[#allocation4] sm:$0x1] %v3433_v0  ;;  %314 = vst [vmem:[#allocation5] sm:$0x1] %v3433_v0  ;;  %302 = vmatprep.mubr.f32.mxu1 %v3433_v0  ;;  %v86_v2 = vld [vmem:[#allocation9 + $0x28] sm:$0xff]  ;;  %v88_v5 = vld [vmem:[#allocation9 + $0x38] sm:$0xff] }
  0x4d   :  { %315 = vst [vmem:[#allocation3] sm:$0xff] %v3433_v0  ;;  %v2593_v4 = vpack.c.bf16 %v86_v2, %v82_v1  ;;  %v81_v6 = vld [vmem:[#allocation9] sm:$0xff]  ;;  %v2625_v8 = vpack.c.bf16 %v88_v5, %v84_v3  ;;  %v83_v10 = vld [vmem:[#allocation9 + $0x10] sm:$0xff]  ;;  %v90_v12 = vld [vmem:[#allocation9 + $0x48] sm:$0xff] }
  0x4e   :  { %v85_v7 = vld [vmem:[#allocation9 + $0x20] sm:$0xff]  ;;  %v87_v11 = vld [vmem:[#allocation9 + $0x30] sm:$0xff]  ;;  %v94_v14 = vld [vmem:[#allocation9 + $0x68] sm:$0xff] }
  0x4f   :  { %v2595_v9 = vpack.c.bf16 %v85_v7, %v81_v6  ;;  %2594 = vmatprep.subr.bf16.mxu0 %v2593_v4  ;;  %v2627_v13 = vpack.c.bf16 %v87_v11, %v83_v10  ;;  %v92_v15 = vld [vmem:[#allocation9 + $0x58] sm:$0xff]  ;;  %2626 = vmatprep.subr.bf16.mxu1 %v2625_v8  ;;  %v2597_v17 = vpack.c.bf16 %v94_v14, %v90_v12  ;;  %v89_v19 = vld [vmem:[#allocation9 + $0x40] sm:$0xff]  ;;  %v91_v21 = vld [vmem:[#allocation9 + $0x50] sm:$0xff] }
  0x50   :  { %v96_v16 = vld [vmem:[#allocation9 + $0x78] sm:$0xff]  ;;  %v93_v20 = vld [vmem:[#allocation9 + $0x60] sm:$0xff]  ;;  %v95_v23 = vld [vmem:[#allocation9 + $0x70] sm:$0xff] }
  0x51   :  { %2596 = vmatpush1.bf16.msra.mxu0 %v2595_v9  ;;  %v2629_v18 = vpack.c.bf16 %v96_v16, %v92_v15  ;;  %2628 = vmatpush1.bf16.msra.mxu1 %v2627_v13  ;;  %v2599_v22 = vpack.c.bf16 %v93_v20, %v89_v19  ;;  %v98_v24 = vld [vmem:[#allocation9 + $0x88] sm:$0xff]  ;;  %v2631_v26 = vpack.c.bf16 %v95_v23, %v91_v21  ;;  %v100_v28 = vld [vmem:[#allocation9 + $0x98] sm:$0xff]  ;;  %v97_v30 = vld [vmem:[#allocation9 + $0x80] sm:$0xff] }
  0x52   :  { %v102_v25 = vld [vmem:[#allocation9 + $0xa8] sm:$0xff]  ;;  %2598 = vmatprep.subr.bf16.mxu0 %v2597_v17  ;;  %v104_v29 = vld [vmem:[#allocation9 + $0xb8] sm:$0xff]  ;;  %v101_v32 = vld [vmem:[#allocation9 + $0xa0] sm:$0xff] }
  0x53   :  { %2630 = vmatprep.subr.bf16.mxu1 %v2629_v18  ;;  %v2601_v27 = vpack.c.bf16 %v102_v25, %v98_v24  ;;  %v2633_v31 = vpack.c.bf16 %v104_v29, %v100_v28  ;;  %v99_v33 = vld [vmem:[#allocation9 + $0x90] sm:$0xff]  ;;  %v2603_v35 = vpack.c.bf16 %v101_v32, %v97_v30  ;;  %v106_v36 = vld [vmem:[#allocation9 + $0xc8] sm:$0xff]  ;;  %v108_v38 = vld [vmem:[#allocation9 + $0xd8] sm:$0xff] }
  0x54   :  { %v103_v34 = vld [vmem:[#allocation9 + $0xb0] sm:$0xff]  ;;  %v110_v37 = vld [vmem:[#allocation9 + $0xe8] sm:$0xff]  ;;  %v112_v41 = vld [vmem:[#allocation9 + $0xf8] sm:$0xff] }
  0x55   :  { %2600 = vmatpush1.bf16.msra.mxu0 %v2599_v22  ;;  %2632 = vmatpush1.bf16.msra.mxu1 %v2631_v26  ;;  %v2635_v39 = vpack.c.bf16 %v103_v34, %v99_v33  ;;  %v2605_v40 = vpack.c.bf16 %v110_v37, %v106_v36  ;;  %v105_v42 = vld [vmem:[#allocation9 + $0xc0] sm:$0xff]  ;;  %v2637_v44 = vpack.c.bf16 %v112_v41, %v108_v38  ;;  %v107_v45 = vld [vmem:[#allocation9 + $0xd0] sm:$0xff]  ;;  %v114_v47 = vld [vmem:[#allocation9 + $0x108] sm:$0xff] }
  0x56   :  { %2602 = vmatprep.subr.bf16.mxu0 %v2601_v27  ;;  %v109_v43 = vld [vmem:[#allocation9 + $0xe0] sm:$0xff]  ;;  %2634 = vmatprep.subr.bf16.mxu1 %v2633_v31  ;;  %v111_v46 = vld [vmem:[#allocation9 + $0xf0] sm:$0xff]  ;;  %v118_v48 = vld [vmem:[#allocation9 + $0x128] sm:$0xff] }
  0x57   :  { %v116_v49 = vld [vmem:[#allocation9 + $0x118] sm:$0xff]  ;;  %v2607_v51 = vpack.c.bf16 %v109_v43, %v105_v42  ;;  %v2639_v52 = vpack.c.bf16 %v111_v46, %v107_v45  ;;  %v2609_v53 = vpack.c.bf16 %v118_v48, %v114_v47  ;;  %v113_v54 = vld [vmem:[#allocation9 + $0x100] sm:$0xff]  ;;  %v115_v56 = vld [vmem:[#allocation9 + $0x110] sm:$0xff] }
  0x58   :  { %v120_v50 = vld [vmem:[#allocation9 + $0x138] sm:$0xff]  ;;  %v117_v55 = vld [vmem:[#allocation9 + $0x120] sm:$0xff]  ;;  %v119_v58 = vld [vmem:[#allocation9 + $0x130] sm:$0xff] }
  0x59   :  { %2604 = vmatpush1.bf16.msra.mxu0 %v2603_v35  ;;  %2636 = vmatpush1.bf16.msra.mxu1 %v2635_v39  ;;  %v2641_v57 = vpack.c.bf16 %v120_v50, %v116_v49  ;;  %v122_v59 = vld [vmem:[#allocation9 + $0x148] sm:$0xff]  ;;  %v124_v61 = vld [vmem:[#allocation9 + $0x158] sm:$0xff]  ;;  %v2611_v63 = vpack.c.bf16 %v117_v55, %v113_v54  ;;  %v2643_v1 = vpack.c.bf16 %v119_v58, %v115_v56  ;;  %v121_v3 = vld [vmem:[#allocation9 + $0x140] sm:$0xff] }
  0x5a   :  { %2606 = vmatprep.subr.bf16.mxu0 %v2605_v40  ;;  %2638 = vmatprep.subr.bf16.mxu1 %v2637_v44  ;;  %v126_v60 = vld [vmem:[#allocation9 + $0x168] sm:$0xff]  ;;  %v128_v62 = vld [vmem:[#allocation9 + $0x178] sm:$0xff]  ;;  %v125_v4 = vld [vmem:[#allocation9 + $0x160] sm:$0xff] }
  0x5b   :  { %v2613_v2 = vpack.c.bf16 %v126_v60, %v122_v59  ;;  %v123_v5 = vld [vmem:[#allocation9 + $0x150] sm:$0xff]  ;;  %v2645_v6 = vpack.c.bf16 %v128_v62, %v124_v61  ;;  %v130_v8 = vld [vmem:[#allocation9 + $0x188] sm:$0xff]  ;;  %v132_v10 = vld [vmem:[#allocation9 + $0x198] sm:$0xff]  ;;  %v2615_v12 = vpack.c.bf16 %v125_v4, %v121_v3 }
  0x5c   :  { %v127_v7 = vld [vmem:[#allocation9 + $0x170] sm:$0xff]  ;;  %v134_v9 = vld [vmem:[#allocation9 + $0x1a8] sm:$0xff]  ;;  %v136_v11 = vld [vmem:[#allocation9 + $0x1b8] sm:$0xff] }
  0x5d   :  { %2608 = vmatpush1.bf16.msra.mxu0 %v2607_v51  ;;  %2640 = vmatpush1.bf16.msra.mxu1 %v2639_v52  ;;  %v2647_v13 = vpack.c.bf16 %v127_v7, %v123_v5  ;;  %v2617_v14 = vpack.c.bf16 %v134_v9, %v130_v8  ;;  %v129_v15 = vld [vmem:[#allocation9 + $0x180] sm:$0xff]  ;;  %v131_v17 = vld [vmem:[#allocation9 + $0x190] sm:$0xff]  ;;  %v2649_v18 = vpack.c.bf16 %v136_v11, %v132_v10  ;;  %v138_v20 = vld [vmem:[#allocation9 + $0x1c8] sm:$0xff] }
  0x5e   :  { %2610 = vmatprep.subr.bf16.mxu0 %v2609_v53  ;;  %2642 = vmatprep.subr.bf16.mxu1 %v2641_v57  ;;  %v133_v16 = vld [vmem:[#allocation9 + $0x1a0] sm:$0xff]  ;;  %v135_v19 = vld [vmem:[#allocation9 + $0x1b0] sm:$0xff]  ;;  %v142_v21 = vld [vmem:[#allocation9 + $0x1e8] sm:$0xff] }
  0x5f   :  { %v140_v22 = vld [vmem:[#allocation9 + $0x1d8] sm:$0xff]  ;;  %v2619_v24 = vpack.c.bf16 %v133_v16, %v129_v15  ;;  %v2651_v25 = vpack.c.bf16 %v135_v19, %v131_v17  ;;  %v2621_v26 = vpack.c.bf16 %v142_v21, %v138_v20  ;;  %v137_v27 = vld [vmem:[#allocation9 + $0x1c0] sm:$0xff]  ;;  %v139_v29 = vld [vmem:[#allocation9 + $0x1d0] sm:$0xff] }
  0x60   :  { %v144_v23 = vld [vmem:[#allocation9 + $0x1f8] sm:$0xff]  ;;  %v141_v28 = vld [vmem:[#allocation9 + $0x1e0] sm:$0xff]  ;;  %v143_v31 = vld [vmem:[#allocation9 + $0x1f0] sm:$0xff] }
  0x61   :  { %2612 = vmatpush1.bf16.msra.mxu0 %v2611_v63  ;;  %2644 = vmatpush1.bf16.msra.mxu1 %v2643_v1  ;;  %v2653_v30 = vpack.c.bf16 %v144_v23, %v140_v22  ;;  %v319_v32 = vld [vmem:[#allocation11 + $0x8] sm:$0xff]  ;;  %v321_v34 = vld [vmem:[#allocation11 + $0x18] sm:$0xff]  ;;  %v2623_v36 = vpack.c.bf16 %v141_v28, %v137_v27  ;;  %v2655_v37 = vpack.c.bf16 %v143_v31, %v139_v29  ;;  %v318_v39 = vld [vmem:[#allocation11] sm:$0xff] }
  0x62   :  { %2614 = vmatprep.subr.bf16.mxu0 %v2613_v2  ;;  %2646 = vmatprep.subr.bf16.mxu1 %v2645_v6  ;;  %v323_v33 = vld [vmem:[#allocation11 + $0x28] sm:$0xff]  ;;  %v325_v35 = vld [vmem:[#allocation11 + $0x38] sm:$0xff]  ;;  %v322_v40 = vld [vmem:[#allocation11 + $0x20] sm:$0xff] }
  0x63   :  { %v3536_v38 = vpack.c.bf16 %v323_v33, %v319_v32  ;;  %v320_v41 = vld [vmem:[#allocation11 + $0x10] sm:$0xff]  ;;  %v3538_v42 = vpack.c.bf16 %v325_v35, %v321_v34  ;;  %v327_v44 = vld [vmem:[#allocation11 + $0x48] sm:$0xff]  ;;  %v329_v46 = vld [vmem:[#allocation11 + $0x58] sm:$0xff]  ;;  %v3540_v49 = vpack.c.bf16 %v322_v40, %v318_v39 }
  0x64   :  { %v324_v43 = vld [vmem:[#allocation11 + $0x30] sm:$0xff]  ;;  %v331_v45 = vld [vmem:[#allocation11 + $0x68] sm:$0xff]  ;;  %v333_v47 = vld [vmem:[#allocation11 + $0x78] sm:$0xff] }
  0x65   :  { %2616 = vmatpush1.bf16.msra.mxu0 %v2615_v12  ;;  %2648 = vmatpush1.bf16.msra.mxu1 %v2647_v13  ;;  %v80_v48 = vld [vmem:[#allocation6] sm:$0xff]  ;;  %v3543_v50 = vpack.c.bf16 %v324_v43, %v320_v41  ;;  %v3545_v51 = vpack.c.bf16 %v331_v45, %v327_v44  ;;  %v326_v52 = vld [vmem:[#allocation11 + $0x40] sm:$0xff]  ;;  %v328_v54 = vld [vmem:[#allocation11 + $0x50] sm:$0xff]  ;;  %v3548_v55 = vpack.c.bf16 %v333_v47, %v329_v46 }
  0x66   :  { %2618 = vmatprep.subr.bf16.mxu0 %v2617_v14  ;;  %2650 = vmatprep.subr.bf16.mxu1 %v2649_v18  ;;  %v330_v53 = vld [vmem:[#allocation11 + $0x60] sm:$0xff]  ;;  %v332_v56 = vld [vmem:[#allocation11 + $0x70] sm:$0xff]  ;;  %v335_v57 = vld [vmem:[#allocation11 + $0x88] sm:$0xff] }
  0x67   :  { %v339_v58 = vld [vmem:[#allocation11 + $0xa8] sm:$0xff]  ;;  %v337_v59 = vld [vmem:[#allocation11 + $0x98] sm:$0xff]  ;;  %v3551_v61 = vpack.c.bf16 %v330_v53, %v326_v52  ;;  %v3555_v62 = vpack.c.bf16 %v332_v56, %v328_v54  ;;  %v334_v1 = vld [vmem:[#allocation11 + $0x80] sm:$0xff] }
  0x68   :  { %v341_v60 = vld [vmem:[#allocation11 + $0xb8] sm:$0xff]  ;;  %v3557_v63 = vpack.c.bf16 %v339_v58, %v335_v57  ;;  %v338_v2 = vld [vmem:[#allocation11 + $0xa0] sm:$0xff]  ;;  %v336_v3 = vld [vmem:[#allocation11 + $0x90] sm:$0xff] }
  0x69   :  { %2620 = vmatpush1.bf16.msra.mxu0 %v2619_v24  ;;  %2652 = vmatpush1.bf16.msra.mxu1 %v2651_v25  ;;  %v3560_v4 = vpack.c.bf16 %v341_v60, %v337_v59  ;;  %v340_v5 = vld [vmem:[#allocation11 + $0xb0] sm:$0xff]  ;;  %v343_v6 = vld [vmem:[#allocation11 + $0xc8] sm:$0xff]  ;;  %v345_v8 = vld [vmem:[#allocation11 + $0xd8] sm:$0xff]  ;;  %v3565_v10 = vpack.c.bf16 %v338_v2, %v334_v1 }
  0x6a   :  { %2622 = vmatprep.subr.bf16.mxu0 %v2621_v26  ;;  %2654 = vmatprep.subr.bf16.mxu1 %v2653_v30  ;;  %v347_v7 = vld [vmem:[#allocation11 + $0xe8] sm:$0xff]  ;;  %v349_v9 = vld [vmem:[#allocation11 + $0xf8] sm:$0xff]  ;;  %v3569_v11 = vpack.c.bf16 %v340_v5, %v336_v3  ;;  %v342_v13 = vld [vmem:[#allocation11 + $0xc0] sm:$0xff] }
  0x6b   :  { %v3571_v12 = vpack.c.bf16 %v347_v7, %v343_v6  ;;  %v346_v14 = vld [vmem:[#allocation11 + $0xe0] sm:$0xff]  ;;  %v344_v15 = vld [vmem:[#allocation11 + $0xd0] sm:$0xff]  ;;  %v3574_v16 = vpack.c.bf16 %v349_v9, %v345_v8  ;;  %v351_v18 = vld [vmem:[#allocation11 + $0x108] sm:$0xff] }
  0x6c   :  { %v348_v17 = vld [vmem:[#allocation11 + $0xf0] sm:$0xff]  ;;  %v355_v19 = vld [vmem:[#allocation11 + $0x128] sm:$0xff]  ;;  %v353_v20 = vld [vmem:[#allocation11 + $0x118] sm:$0xff]  ;;  %v3577_v22 = vpack.c.bf16 %v346_v14, %v342_v13 }
  0x6d   :  { %2624 = vmatpush1.bf16.msra.mxu0 %v2623_v36  ;;  %2656 = vmatpush1.bf16.msra.mxu1 %v2655_v37  ;;  %v357_v21 = vld [vmem:[#allocation11 + $0x138] sm:$0xff]  ;;  %v3581_v23 = vpack.c.bf16 %v348_v17, %v344_v15  ;;  %v3583_v24 = vpack.c.bf16 %v355_v19, %v351_v18  ;;  %v350_v25 = vld [vmem:[#allocation11 + $0x100] sm:$0xff]  ;;  %v352_v27 = vld [vmem:[#allocation11 + $0x110] sm:$0xff] }
  0x6e   :  { %2658 = vmatprep.subr.bf16.mxu0 %v3536_v38  ;;  %2690 = vmatprep.subr.bf16.mxu1 %v3538_v42  ;;  %v354_v26 = vld [vmem:[#allocation11 + $0x120] sm:$0xff]  ;;  %v3586_v28 = vpack.c.bf16 %v357_v21, %v353_v20  ;;  %v356_v29 = vld [vmem:[#allocation11 + $0x130] sm:$0xff]  ;;  %v359_v30 = vld [vmem:[#allocation11 + $0x148] sm:$0xff]  ;;  %v147_v20 = vlaneseq }
  0x6f   :  { %v363_v31 = vld [vmem:[#allocation11 + $0x168] sm:$0xff]  ;;  %v361_v32 = vld [vmem:[#allocation11 + $0x158] sm:$0xff]  ;;  %v3589_v34 = vpack.c.bf16 %v354_v26, %v350_v25  ;;  %v3593_v35 = vpack.c.bf16 %v356_v29, %v352_v27  ;;  %v358_v37 = vld [vmem:[#allocation11 + $0x140] sm:$0xff] }
  0x70   :  { %232 = vmatmul.mubr.f32.vlgmr.msra.gmra.mrb[0].mxu0 %v80_v48  ;;  %303 = vmatmul.mubr.f32.vlgmr.msra.gmra.mrb[0].mxu1 %v80_v48  ;;  %v365_v33 = vld [vmem:[#allocation11 + $0x178] sm:$0xff]  ;;  %v3595_v36 = vpack.c.bf16 %v363_v31, %v359_v30  ;;  %v362_v39 = vld [vmem:[#allocation11 + $0x160] sm:$0xff]  ;;  %v360_v40 = vld [vmem:[#allocation11 + $0x150] sm:$0xff]  ;;  %v3670_v21 = vshrl.u32 %v147_v20, 7 }
  0x71   :  { %2660 = vmatpush1.bf16.msra.mxu0 %v3540_v49  ;;  %2692 = vmatpush1.bf16.msra.mxu1 %v3543_v50  ;;  %v3598_v41 = vpack.c.bf16 %v365_v33, %v361_v32  ;;  %v364_v43 = vld [vmem:[#allocation11 + $0x170] sm:$0xff]  ;;  %v367_v44 = vld [vmem:[#allocation11 + $0x188] sm:$0xff]  ;;  %v369_v46 = vld [vmem:[#allocation11 + $0x198] sm:$0xff]  ;;  %v3601_v48 = vpack.c.bf16 %v362_v39, %v358_v37 }
  0x72   :  { %2662 = vmatprep.subr.bf16.mxu0 %v3545_v51  ;;  %2694 = vmatprep.subr.bf16.mxu1 %v3548_v55  ;;  %v371_v45 = vld [vmem:[#allocation11 + $0x1a8] sm:$0xff]  ;;  %v373_v47 = vld [vmem:[#allocation11 + $0x1b8] sm:$0xff]  ;;  %v3605_v52 = vpack.c.bf16 %v364_v43, %v360_v40  ;;  %v366_v54 = vld [vmem:[#allocation11 + $0x180] sm:$0xff]  ;;  %v149_v25 = vsub.s32 0, %v3670_v21  ;;  %v157_v27 = vsub.s32 2, %v3670_v21  ;;  %v153_v29 = vsub.s32 1, %v3670_v21 }
  0x73   :  { %446 = vmatprep.mubr.f32.mxu0 %v3433_v0  ;;  %517 = vmatprep.mubr.f32.mxu1 %v3433_v0  ;;  %v3607_v53 = vpack.c.bf16 %v371_v45, %v367_v44  ;;  %v370_v56 = vld [vmem:[#allocation11 + $0x1a0] sm:$0xff]  ;;  %v368_v57 = vld [vmem:[#allocation11 + $0x190] sm:$0xff]  ;;  %v3610_v58 = vpack.c.bf16 %v373_v47, %v369_v46  ;;  %v375_v60 = vld [vmem:[#allocation11 + $0x1c8] sm:$0xff]  ;;  %v161_v30 = vsub.s32 3, %v3670_v21  ;;  %v3434_v47 = vmov 1966171168  }
  0x74   :  { %v372_v59 = vld [vmem:[#allocation11 + $0x1b0] sm:$0xff]  ;;  %v379_v1 = vld [vmem:[#allocation11 + $0x1e8] sm:$0xff]  ;;  %v377_v2 = vld [vmem:[#allocation11 + $0x1d8] sm:$0xff]  ;;  %v3613_v5 = vpack.c.bf16 %v370_v56, %v366_v54  ;;  %v531_v54 = vunpack.c.l.s4 %v3434_v47 }
  0x75   :  { %2664 = vmatpush1.bf16.msra.mxu0 %v3551_v61  ;;  %2696 = vmatpush1.bf16.msra.mxu1 %v3555_v62  ;;  %v381_v3 = vld [vmem:[#allocation11 + $0x1f8] sm:$0xff]  ;;  %v3617_v6 = vpack.c.bf16 %v372_v59, %v368_v57  ;;  %v3619_v7 = vpack.c.bf16 %v379_v1, %v375_v60  ;;  %v374_v8 = vld [vmem:[#allocation11 + $0x1c0] sm:$0xff]  ;;  %v376_v14 = vld [vmem:[#allocation11 + $0x1d0] sm:$0xff] }
  0x76   :  { %2666 = vmatprep.subr.bf16.mxu0 %v3557_v63  ;;  %2698 = vmatprep.subr.bf16.mxu1 %v3560_v4  ;;  %v378_v9 = vld [vmem:[#allocation11 + $0x1e0] sm:$0xff]  ;;  %v3622_v13 = vpack.c.bf16 %v381_v3, %v377_v2  ;;  %v380_v15 = vld [vmem:[#allocation11 + $0x1f0] sm:$0xff]  ;;  %v532_v56 = vunpack.c.0.s8 %v531_v54 }
  0x77   :  { %v3625_v17 = vpack.c.bf16 %v378_v9, %v374_v8  ;;  %v3629_v18 = vpack.c.bf16 %v380_v15, %v376_v14  ;;  %v317_v19 = vld [vmem:[#allocation4] sm:$0x1]  ;;  %v145_v26 = vld [vmem:[%s3979_s3] sm:$0xf] }
  0x78   :  { %v158_v31 = vrot.slane %v145_v26, %v157_v27  ;;  %v162_v32 = vrot.slane %v145_v26, %v161_v30  ;;  %v3684_v57 = vsub.s32 %v532_v56, %v3670_v21  ;;  %v1114_v56 = vld [vmem:[#allocation11 + $0x38] sm:$0xff] }
  0x79   :  { %2668 = vmatpush1.bf16.msra.mxu0 %v3565_v10  ;;  %2700 = vmatpush1.bf16.msra.mxu1 %v3569_v11 }
  0x7a   :  { %2670 = vmatprep.subr.bf16.mxu0 %v3571_v12  ;;  %2702 = vmatprep.subr.bf16.mxu1 %v3574_v16 }
  0x7d   :  { %2672 = vmatpush1.bf16.msra.mxu0 %v3577_v22  ;;  %2704 = vmatpush1.bf16.msra.mxu1 %v3581_v23 }
  0x7e   :  { %2674 = vmatprep.subr.bf16.mxu0 %v3583_v24  ;;  %2706 = vmatprep.subr.bf16.mxu1 %v3586_v28 }
  0x81   :  { %2676 = vmatpush1.bf16.msra.mxu0 %v3589_v34  ;;  %2708 = vmatpush1.bf16.msra.mxu1 %v3593_v35 }
  0x82   :  { %2678 = vmatprep.subr.bf16.mxu0 %v3595_v36  ;;  %2710 = vmatprep.subr.bf16.mxu1 %v3598_v41 }
  0x85   :  { %2680 = vmatpush1.bf16.msra.mxu0 %v3601_v48  ;;  %2712 = vmatpush1.bf16.msra.mxu1 %v3605_v52 }
  0x86   :  { %2682 = vmatprep.subr.bf16.mxu0 %v3607_v53  ;;  %2714 = vmatprep.subr.bf16.mxu1 %v3610_v58 }
  0x89   :  { %2684 = vmatpush1.bf16.msra.mxu0 %v3613_v5  ;;  %2716 = vmatpush1.bf16.msra.mxu1 %v3617_v6 }
  0x8a   :  { %2686 = vmatprep.subr.bf16.mxu0 %v3619_v7  ;;  %2718 = vmatprep.subr.bf16.mxu1 %v3622_v13 }
  0x8d   :  { %2688 = vmatpush1.bf16.msra.mxu0 %v3625_v17  ;;  %2720 = vmatpush1.bf16.msra.mxu1 %v3629_v18 }
  0x8e   :  { %2722 = vmatprep.subr.bf16.mxu0 %v3536_v38  ;;  %2754 = vmatprep.subr.bf16.mxu1 %v3538_v42 }
  0x90   :  { %447 = vmatmul.mubr.f32.vlgmr.msra.gmra.mrb[2].mxu0 %v317_v19  ;;  %518 = vmatmul.mubr.f32.vlgmr.msra.gmra.mrb[2].mxu1 %v317_v19 }
  0x91   :  { %2724 = vmatpush1.bf16.msra.mxu0 %v3540_v49  ;;  %2756 = vmatpush1.bf16.msra.mxu1 %v3543_v50 }
  0x92   :  { %2726 = vmatprep.subr.bf16.mxu0 %v3545_v51  ;;  %2758 = vmatprep.subr.bf16.mxu1 %v3548_v55 }
  0x93   :  { %709 = vmatprep.mubr.f32.mxu0 %v3433_v0  ;;  %780 = vmatprep.mubr.f32.mxu1 %v3433_v0 }
  0x95   :  { %2728 = vmatpush1.bf16.msra.mxu0 %v3551_v61  ;;  %2760 = vmatpush1.bf16.msra.mxu1 %v3555_v62 }
  0x96   :  { %2730 = vmatprep.subr.bf16.mxu0 %v3557_v63  ;;  %2762 = vmatprep.subr.bf16.mxu1 %v3560_v4 }
  0x99   :  { %2732 = vmatpush1.bf16.msra.mxu0 %v3565_v10  ;;  %2764 = vmatpush1.bf16.msra.mxu1 %v3569_v11 }
  0x9a   :  { %2734 = vmatprep.subr.bf16.mxu0 %v3571_v12  ;;  %2766 = vmatprep.subr.bf16.mxu1 %v3574_v16 }
  0x9d   :  { %2736 = vmatpush1.bf16.msra.mxu0 %v3577_v22  ;;  %2768 = vmatpush1.bf16.msra.mxu1 %v3581_v23 }
  0x9e   :  { %2738 = vmatprep.subr.bf16.mxu0 %v3583_v24  ;;  %2770 = vmatprep.subr.bf16.mxu1 %v3586_v28 }
  0xa1   :  { %2740 = vmatpush1.bf16.msra.mxu0 %v3589_v34  ;;  %2772 = vmatpush1.bf16.msra.mxu1 %v3593_v35 }
  0xa2   :  { %2742 = vmatprep.subr.bf16.mxu0 %v3595_v36  ;;  %2774 = vmatprep.subr.bf16.mxu1 %v3598_v41 }
  0xa5   :  { %2744 = vmatpush1.bf16.msra.mxu0 %v3601_v48  ;;  %2776 = vmatpush1.bf16.msra.mxu1 %v3605_v52 }
  0xa6   :  { %2746 = vmatprep.subr.bf16.mxu0 %v3607_v53  ;;  %2778 = vmatprep.subr.bf16.mxu1 %v3610_v58 }
  0xa9   :  { %2748 = vmatpush1.bf16.msra.mxu0 %v3613_v5  ;;  %2780 = vmatpush1.bf16.msra.mxu1 %v3617_v6 }
  0xaa   :  { %2750 = vmatprep.subr.bf16.mxu0 %v3619_v7  ;;  %2782 = vmatprep.subr.bf16.mxu1 %v3622_v13 }
  0xad   :  { %2752 = vmatpush1.bf16.msra.mxu0 %v3625_v17  ;;  %2784 = vmatpush1.bf16.msra.mxu1 %v3629_v18 }
  0xae   :  { %2786 = vmatprep.subr.bf16.mxu0 %v3536_v38  ;;  %2818 = vmatprep.subr.bf16.mxu1 %v3538_v42  ;;  %v150_v38 = vrot.slane %v145_v26, %v149_v25  ;;  %v154_v42 = vrot.slane %v145_v26, %v153_v29 }
 0x143   :  { %v233_v33 = vpop.f32.mrb[0].mxu0  ;;  %v304_v39 = vpop.f32.mrb[0].mxu1 }
 0x144   :  { %v234_v37 = vadd.f32 %v233_v33, %v150_v38  ;;  %v235_v40 = vpop.f32.mrb[1].mxu0  ;;  %v305_v43 = vadd.f32 %v304_v39, %v158_v31  ;;  %v306_v45 = vpop.f32.mrb[1].mxu1 }
 0x145   :  { %v236_v44 = vadd.f32 %v235_v40, %v154_v42  ;;  %v307_v46 = vadd.f32 %v306_v45, %v162_v32  ;;  %v564_v32 = vld [vmem:[#allocation5] sm:$0x1] }
 0x146   :  { %309 = vst [vmem:[#allocation2] sm:$0xff] %v234_v37  ;;  %311 = vst [vmem:[#allocation2 + $0x10] sm:$0xff] %v305_v43 }
 0x147   :  { %310 = vst [vmem:[#allocation2 + $0x8] sm:$0xff] %v236_v44  ;;  %312 = vst [vmem:[#allocation2 + $0x18] sm:$0xff] %v307_v46 }
 0x14e   :  { %v316_v20 = vld [vmem:[#allocation2] ss:$8 sm:$0xf] }
 0x163   :  { %v448_v59 = vpop.f32.mrb[2].mxu0  ;;  %v519_v60 = vpop.f32.mrb[2].mxu1 }
 0x164   :  { %v450_v1 = vpop.f32.mrb[3].mxu0  ;;  %v521_v3 = vpop.f32.mrb[3].mxu1 }
 0x165   :  { %v528_v2 = vcombine.low %v448_v59, %v450_v1  ;;  %v529_v8 = vcombine.low %v519_v60, %v521_v3  ;;  %v1107_v59 = vld [vmem:[#allocation11] sm:$0xff]  ;;  %v1109_v3 = vld [vmem:[#allocation11 + $0x10] sm:$0xff] }
 0x166   :  { %v1111_v60 = vld [vmem:[#allocation11 + $0x20] sm:$0xff] }
 0x167   :  { %v536_v9 = vrot.slane %v528_v2, %v3684_v57  ;;  %v543_v14 = vrot.slane %v529_v8, %v3684_v57  ;;  %v3730_v2 = vpack.c.bf16 %v1111_v60, %v1107_v59  ;;  %v1113_v8 = vld [vmem:[#allocation11 + $0x30] sm:$0xff]  ;;  %v1154_v60 = vld [vmem:[#allocation11 + $0x178] sm:$0xff] }
 0x169   :  { %v544_v15 = vcombine.low %v536_v9, %v543_v14  ;;  %v3733_v9 = vpack.c.bf16 %v1113_v8, %v1109_v3  ;;  %v1116_v14 = vld [vmem:[#allocation11 + $0x48] sm:$0xff]  ;;  %v1147_v3 = vld [vmem:[#allocation11 + $0x140] sm:$0xff] }
 0x16a   :  { %v1151_v8 = vld [vmem:[#allocation11 + $0x160] sm:$0xff] }
 0x16b   :  { %v551_v19 = vrot.slane %v544_v15, %v3684_v57  ;;  %v1120_v15 = vld [vmem:[#allocation11 + $0x68] sm:$0xff] }
 0x16d   :  { %v553_v26 = vadd.f32 %v551_v19, %v316_v20  ;;  %v1118_v19 = vld [vmem:[#allocation11 + $0x58] sm:$0xff]  ;;  %v3738_v20 = vpack.c.bf16 %v1120_v15, %v1116_v14  ;;  %v3790_v15 = vpack.c.bf16 %v1151_v8, %v1147_v3 }
 0x16f   :  { %v2585_v27 = vmul.f32 -1.442695, %v553_v26  ;;  %v561_v31 = vrot.slane %v553_v26, 3  ;;  %v1122_v26 = vld [vmem:[#allocation11 + $0x78] sm:$0xff] }
 0x171   :  { %3213 = vpow2.f32 %v2585_v27  ;;  %v1115_v27 = vld [vmem:[#allocation11 + $0x40] sm:$0xff] }
 0x17b   :  { %v3214_v30 = vpop.eup %3213 }
 0x17c   :  { %v557_v38 = vadd.f32 1.0, %v3214_v30  ;;  %v1119_v30 = vld [vmem:[#allocation11 + $0x60] sm:$0xff] }
 0x17e   :  { %3215 = vrcp.f32 %v557_v38  ;;  %v3740_v38 = vpack.c.bf16 %v1122_v26, %v1118_v19  ;;  %v1149_v19 = vld [vmem:[#allocation11 + $0x150] sm:$0xff] }
 0x17f   :  { %3217 = vtanh.f32 %v561_v31  ;;  %v3742_v31 = vpack.c.bf16 %v1119_v30, %v1115_v27  ;;  %v1153_v26 = vld [vmem:[#allocation11 + $0x170] sm:$0xff]  ;;  %v1156_v30 = vld [vmem:[#allocation11 + $0x188] sm:$0xff] }
 0x180   :  { %v3793_v27 = vpack.c.bf16 %v1153_v26, %v1149_v19  ;;  %v842_v26 = vld [vmem:[#allocation2 + $0x2] ss:$8 sm:$0xf] }
 0x188   :  { %v3216_v42 = vpop.eup %3215 }
 0x189   :  { %v566_v33 = vrot.slane %v3216_v42, 1  ;;  %v3218_v37 = vpop.eup %3217  ;;  %v572_v44 = vrot.slane %v3216_v42, 2 }
 0x18a   :  { %v569_v40 = vmul.f32 %v3218_v37, %v3216_v42  ;;  %v1117_v42 = vld [vmem:[#allocation11 + $0x50] sm:$0xff]  ;;  %v1124_v37 = vld [vmem:[#allocation11 + $0x88] sm:$0xff] }
 0x18b   :  { %v568_v39 = vmul.f32 %v566_v33, %v564_v32  ;;  %v1121_v32 = vld [vmem:[#allocation11 + $0x70] sm:$0xff] }
 0x18c   :  { %v3745_v33 = vpack.c.bf16 %v1121_v32, %v1117_v42  ;;  %v1160_v42 = vld [vmem:[#allocation11 + $0x1a8] sm:$0xff]  ;;  %v1158_v32 = vld [vmem:[#allocation11 + $0x198] sm:$0xff] }
 0x18d   :  { %v570_v43 = vadd.f32 %v569_v40, %v568_v39  ;;  %v1128_v39 = vld [vmem:[#allocation11 + $0xa8] sm:$0xff]  ;;  %v1126_v40 = vld [vmem:[#allocation11 + $0x98] sm:$0xff] }
 0x18f   :  { %3219 = vtanh.f32 %v570_v43  ;;  %575 = vst [vmem:[#allocation5] sm:$0x1] %v570_v43  ;;  %v3750_v43 = vpack.c.bf16 %v1128_v39, %v1124_v37  ;;  %v3798_v37 = vpack.c.bf16 %v1160_v42, %v1156_v30  ;;  %v1162_v39 = vld [vmem:[#allocation11 + $0x1b8] sm:$0xff] }
 0x199   :  { %v3220_v45 = vpop.eup %3219 }
 0x19a   :  { %v574_v46 = vmul.f32 %v3220_v45, %v572_v44  ;;  %v1130_v44 = vld [vmem:[#allocation11 + $0xb8] sm:$0xff]  ;;  %v1123_v45 = vld [vmem:[#allocation11 + $0x80] sm:$0xff] }
 0x19c   :  { %576 = vst [vmem:[#allocation4] sm:$0x1] %v574_v46  ;;  %577 = vst [vmem:[#allocation3] sm:$0x1] %v574_v46  ;;  %v1127_v46 = vld [vmem:[#allocation11 + $0xa0] sm:$0xff] }
 0x1a3   :  { %v580_v47 = vld [vmem:[#allocation4] sm:$0x1] }
 0x1a4   :  { %710 = vmatmul.mubr.f32.vlgmr.msra.gmra.mrb[4].mxu0 %v580_v47  ;;  %781 = vmatmul.mubr.f32.vlgmr.msra.gmra.mrb[4].mxu1 %v580_v47  ;;  %v3752_v47 = vpack.c.bf16 %v1130_v44, %v1126_v40  ;;  %v1155_v40 = vld [vmem:[#allocation11 + $0x180] sm:$0xff] }
 0x1a5   :  { %2788 = vmatpush1.bf16.msra.mxu0 %v3540_v49  ;;  %2820 = vmatpush1.bf16.msra.mxu1 %v3543_v50  ;;  %v1159_v44 = vld [vmem:[#allocation11 + $0x1a0] sm:$0xff] }
 0x1a6   :  { %2790 = vmatprep.subr.bf16.mxu0 %v3545_v51  ;;  %2822 = vmatprep.subr.bf16.mxu1 %v3548_v55 }
 0x1a7   :  { %972 = vmatprep.mubr.f32.mxu0 %v3433_v0  ;;  %1043 = vmatprep.mubr.f32.mxu1 %v3433_v0 }
 0x1a9   :  { %2792 = vmatpush1.bf16.msra.mxu0 %v3551_v61  ;;  %2824 = vmatpush1.bf16.msra.mxu1 %v3555_v62 }
 0x1aa   :  { %2794 = vmatprep.subr.bf16.mxu0 %v3557_v63  ;;  %2826 = vmatprep.subr.bf16.mxu1 %v3560_v4 }
 0x1ad   :  { %2796 = vmatpush1.bf16.msra.mxu0 %v3565_v10  ;;  %2828 = vmatpush1.bf16.msra.mxu1 %v3569_v11 }
 0x1ae   :  { %2798 = vmatprep.subr.bf16.mxu0 %v3571_v12  ;;  %2830 = vmatprep.subr.bf16.mxu1 %v3574_v16  ;;  %v579_v12 = vld [vmem:[#allocation2 + $0x1] ss:$8 sm:$0xf] }
 0x1b1   :  { %2800 = vmatpush1.bf16.msra.mxu0 %v3577_v22  ;;  %2832 = vmatpush1.bf16.msra.mxu1 %v3581_v23 }
 0x1b2   :  { %2802 = vmatprep.subr.bf16.mxu0 %v3583_v24  ;;  %2834 = vmatprep.subr.bf16.mxu1 %v3586_v28 }
 0x1b5   :  { %2804 = vmatpush1.bf16.msra.mxu0 %v3589_v34  ;;  %2836 = vmatpush1.bf16.msra.mxu1 %v3593_v35 }
 0x1b6   :  { %2806 = vmatprep.subr.bf16.mxu0 %v3595_v36  ;;  %2838 = vmatprep.subr.bf16.mxu1 %v3598_v41  ;;  %v827_v41 = vld [vmem:[#allocation5] sm:$0x1] }
 0x1b9   :  { %2808 = vmatpush1.bf16.msra.mxu0 %v3601_v48  ;;  %2840 = vmatpush1.bf16.msra.mxu1 %v3605_v52 }
 0x1ba   :  { %2810 = vmatprep.subr.bf16.mxu0 %v3607_v53  ;;  %2842 = vmatprep.subr.bf16.mxu1 %v3610_v58 }
 0x1bd   :  { %2812 = vmatpush1.bf16.msra.mxu0 %v3613_v5  ;;  %2844 = vmatpush1.bf16.msra.mxu1 %v3617_v6 }
 0x1be   :  { %2814 = vmatprep.subr.bf16.mxu0 %v3619_v7  ;;  %2846 = vmatprep.subr.bf16.mxu1 %v3622_v13  ;;  %v1108_v13 = vld [vmem:[#allocation11 + $0x8] sm:$0xff] }
 0x1c1   :  { %2816 = vmatpush1.bf16.msra.mxu0 %v3625_v17  ;;  %2848 = vmatpush1.bf16.msra.mxu1 %v3629_v18  ;;  %v1112_v17 = vld [vmem:[#allocation11 + $0x28] sm:$0xff]  ;;  %v1110_v18 = vld [vmem:[#allocation11 + $0x18] sm:$0xff] }
 0x1c2   :  { %v3726_v54 = vpack.c.bf16 %v1112_v17, %v1108_v13  ;;  %v3728_v1 = vpack.c.bf16 %v1114_v56, %v1110_v18  ;;  %v1148_v17 = vld [vmem:[#allocation11 + $0x148] sm:$0xff]  ;;  %v1150_v56 = vld [vmem:[#allocation11 + $0x158] sm:$0xff] }
 0x1c3   :  { %v1152_v18 = vld [vmem:[#allocation11 + $0x168] sm:$0xff]  ;;  %v3788_v14 = vpack.c.bf16 %v1154_v60, %v1150_v56 }
 0x1c4   :  { %2850 = vmatprep.subr.bf16.mxu0 %v3726_v54  ;;  %2882 = vmatprep.subr.bf16.mxu1 %v3728_v1  ;;  %v3786_v59 = vpack.c.bf16 %v1152_v18, %v1148_v17 }
 0x277   :  { %v711_v49 = vpop.f32.mrb[4].mxu0  ;;  %v782_v50 = vpop.f32.mrb[4].mxu1 }
 0x278   :  { %v713_v51 = vpop.f32.mrb[5].mxu0  ;;  %v784_v55 = vpop.f32.mrb[5].mxu1 }
 0x279   :  { %v791_v61 = vcombine.low %v711_v49, %v713_v51  ;;  %v792_v62 = vcombine.low %v782_v50, %v784_v55  ;;  %v3754_v49 = vpack.c.bf16 %v1127_v46, %v1123_v45  ;;  %v1125_v50 = vld [vmem:[#allocation11 + $0x90] sm:$0xff]  ;;  %v3800_v45 = vpack.c.bf16 %v1162_v39, %v1158_v32 }
 0x27a   :  { %v1129_v51 = vld [vmem:[#allocation11 + $0xb0] sm:$0xff]  ;;  %v3802_v46 = vpack.c.bf16 %v1159_v44, %v1155_v40 }
 0x27b   :  { %v799_v63 = vrot.slane %v791_v61, %v3684_v57  ;;  %v806_v4 = vrot.slane %v792_v62, %v3684_v57  ;;  %v3757_v55 = vpack.c.bf16 %v1129_v51, %v1125_v50  ;;  %v1132_v61 = vld [vmem:[#allocation11 + $0xc8] sm:$0xff]  ;;  %v1157_v50 = vld [vmem:[#allocation11 + $0x190] sm:$0xff] }
 0x27c   :  { %v1136_v62 = vld [vmem:[#allocation11 + $0xe8] sm:$0xff]  ;;  %v1161_v51 = vld [vmem:[#allocation11 + $0x1b0] sm:$0xff] }
 0x27d   :  { %v807_v10 = vcombine.low %v799_v63, %v806_v4  ;;  %v1134_v63 = vld [vmem:[#allocation11 + $0xd8] sm:$0xff]  ;;  %v3762_v4 = vpack.c.bf16 %v1136_v62, %v1132_v61  ;;  %v1164_v61 = vld [vmem:[#allocation11 + $0x1c8] sm:$0xff]  ;;  %v3805_v62 = vpack.c.bf16 %v1161_v51, %v1157_v50 }
 0x27f   :  { %v814_v11 = vrot.slane %v807_v10, %v3684_v57  ;;  %v1138_v10 = vld [vmem:[#allocation11 + $0xf8] sm:$0xff] }
 0x281   :  { %v816_v16 = vadd.f32 %v814_v11, %v579_v12  ;;  %v1131_v11 = vld [vmem:[#allocation11 + $0xc0] sm:$0xff] }
 0x282   :  { %v1135_v12 = vld [vmem:[#allocation11 + $0xe0] sm:$0xff] }
 0x283   :  { %v2586_v22 = vmul.f32 -1.442695, %v816_v16  ;;  %v824_v28 = vrot.slane %v816_v16, 3  ;;  %v3764_v16 = vpack.c.bf16 %v1138_v10, %v1134_v63  ;;  %v1168_v63 = vld [vmem:[#allocation11 + $0x1e8] sm:$0xff]  ;;  %v1166_v10 = vld [vmem:[#allocation11 + $0x1d8] sm:$0xff] }
 0x285   :  { %3221 = vpow2.f32 %v2586_v22  ;;  %v3766_v22 = vpack.c.bf16 %v1135_v12, %v1131_v11  ;;  %v1170_v11 = vld [vmem:[#allocation11 + $0x1f8] sm:$0xff]  ;;  %v3809_v12 = vpack.c.bf16 %v1168_v63, %v1164_v61 }
 0x28f   :  { %v3222_v23 = vpop.eup %3221 }
 0x290   :  { %v820_v24 = vadd.f32 1.0, %v3222_v23  ;;  %v1133_v23 = vld [vmem:[#allocation11 + $0xd0] sm:$0xff] }
 0x292   :  { %3223 = vrcp.f32 %v820_v24  ;;  %v1137_v24 = vld [vmem:[#allocation11 + $0xf0] sm:$0xff] }
 0x293   :  { %3225 = vtanh.f32 %v824_v28  ;;  %v3769_v28 = vpack.c.bf16 %v1137_v24, %v1133_v23  ;;  %v3811_v23 = vpack.c.bf16 %v1170_v11, %v1166_v10  ;;  %v1163_v24 = vld [vmem:[#allocation11 + $0x1c0] sm:$0xff] }
 0x29c   :  { %v3224_v34 = vpop.eup %3223 }
 0x29d   :  { %v829_v35 = vrot.slane %v3224_v34, 1  ;;  %v3226_v36 = vpop.eup %3225  ;;  %v835_v58 = vrot.slane %v3224_v34, 2 }
 0x29e   :  { %v832_v52 = vmul.f32 %v3226_v36, %v3224_v34  ;;  %v1140_v34 = vld [vmem:[#allocation11 + $0x108] sm:$0xff]  ;;  %v1142_v36 = vld [vmem:[#allocation11 + $0x118] sm:$0xff] }
 0x29f   :  { %v831_v48 = vmul.f32 %v829_v35, %v827_v41  ;;  %v1144_v35 = vld [vmem:[#allocation11 + $0x128] sm:$0xff] }
 0x2a0   :  { %v3774_v41 = vpack.c.bf16 %v1144_v35, %v1140_v34  ;;  %v1167_v34 = vld [vmem:[#allocation11 + $0x1e0] sm:$0xff]  ;;  %v1165_v35 = vld [vmem:[#allocation11 + $0x1d0] sm:$0xff] }
 0x2a1   :  { %v833_v53 = vadd.f32 %v832_v52, %v831_v48  ;;  %v1146_v48 = vld [vmem:[#allocation11 + $0x138] sm:$0xff]  ;;  %v1139_v52 = vld [vmem:[#allocation11 + $0x100] sm:$0xff] }
 0x2a3   :  { %3227 = vtanh.f32 %v833_v53  ;;  %838 = vst [vmem:[#allocation5] sm:$0x1] %v833_v53  ;;  %v1143_v53 = vld [vmem:[#allocation11 + $0x120] sm:$0xff] }
 0x2aa   :  { %v1090_v61 = vld [vmem:[#allocation5] sm:$0x1] }
 0x2ad   :  { %v3228_v5 = vpop.eup %3227 }
 0x2ae   :  { %v837_v6 = vmul.f32 %v3228_v5, %v835_v58  ;;  %v3776_v58 = vpack.c.bf16 %v1146_v48, %v1142_v36  ;;  %v3778_v5 = vpack.c.bf16 %v1143_v53, %v1139_v52  ;;  %v3814_v36 = vpack.c.bf16 %v1167_v34, %v1163_v24  ;;  %v1169_v48 = vld [vmem:[#allocation11 + $0x1f0] sm:$0xff] }
 0x2af   :  { %v3818_v52 = vpack.c.bf16 %v1169_v48, %v1165_v35 }
 0x2b0   :  { %839 = vst [vmem:[#allocation4] sm:$0x1] %v837_v6  ;;  %840 = vst [vmem:[#allocation3 + $0x1] sm:$0x1] %v837_v6  ;;  %v1141_v6 = vld [vmem:[#allocation11 + $0x110] sm:$0xff] }
 0x2b7   :  { %v843_v7 = vld [vmem:[#allocation4] sm:$0x1] }
 0x2b8   :  { %973 = vmatmul.mubr.f32.vlgmr.msra.gmra.mrb[6].mxu0 %v843_v7  ;;  %1044 = vmatmul.mubr.f32.vlgmr.msra.gmra.mrb[6].mxu1 %v843_v7  ;;  %v1145_v7 = vld [vmem:[#allocation11 + $0x130] sm:$0xff] }
 0x2b9   :  { %1235 = vmatprep.mubr.f32.mxu0 %v3433_v0  ;;  %1306 = vmatprep.mubr.f32.mxu1 %v3433_v0  ;;  %v3781_v13 = vpack.c.bf16 %v1145_v7, %v1141_v6 }
 0x2ba   :  { %2852 = vmatpush1.bf16.msra.mxu0 %v3730_v2  ;;  %2884 = vmatpush1.bf16.msra.mxu1 %v3733_v9 }
 0x2bb   :  { %2854 = vmatprep.subr.bf16.mxu0 %v3738_v20  ;;  %2886 = vmatprep.subr.bf16.mxu1 %v3740_v38 }
 0x2be   :  { %2856 = vmatpush1.bf16.msra.mxu0 %v3742_v31  ;;  %2888 = vmatpush1.bf16.msra.mxu1 %v3745_v33 }
 0x2bf   :  { %2858 = vmatprep.subr.bf16.mxu0 %v3750_v43  ;;  %2890 = vmatprep.subr.bf16.mxu1 %v3752_v47 }
 0x2c2   :  { %2860 = vmatpush1.bf16.msra.mxu0 %v3754_v49  ;;  %2892 = vmatpush1.bf16.msra.mxu1 %v3757_v55 }
 0x2c3   :  { %2862 = vmatprep.subr.bf16.mxu0 %v3762_v4  ;;  %2894 = vmatprep.subr.bf16.mxu1 %v3764_v16 }
 0x2c6   :  { %2864 = vmatpush1.bf16.msra.mxu0 %v3766_v22  ;;  %2896 = vmatpush1.bf16.msra.mxu1 %v3769_v28 }
 0x2c7   :  { %2866 = vmatprep.subr.bf16.mxu0 %v3774_v41  ;;  %2898 = vmatprep.subr.bf16.mxu1 %v3776_v58 }
 0x2ca   :  { %2868 = vmatpush1.bf16.msra.mxu0 %v3778_v5  ;;  %2900 = vmatpush1.bf16.msra.mxu1 %v3781_v13 }
 0x2cb   :  { %2870 = vmatprep.subr.bf16.mxu0 %v3786_v59  ;;  %2902 = vmatprep.subr.bf16.mxu1 %v3788_v14 }
 0x2ce   :  { %2872 = vmatpush1.bf16.msra.mxu0 %v3790_v15  ;;  %2904 = vmatpush1.bf16.msra.mxu1 %v3793_v27 }
 0x2cf   :  { %2874 = vmatprep.subr.bf16.mxu0 %v3798_v37  ;;  %2906 = vmatprep.subr.bf16.mxu1 %v3800_v45 }
 0x2d2   :  { %2876 = vmatpush1.bf16.msra.mxu0 %v3802_v46  ;;  %2908 = vmatpush1.bf16.msra.mxu1 %v3805_v62 }
 0x2d3   :  { %2878 = vmatprep.subr.bf16.mxu0 %v3809_v12  ;;  %2910 = vmatprep.subr.bf16.mxu1 %v3811_v23 }
 0x2d6   :  { %2880 = vmatpush1.bf16.msra.mxu0 %v3814_v36  ;;  %2912 = vmatpush1.bf16.msra.mxu1 %v3818_v52 }
 0x2d7   :  { %2914 = vmatprep.subr.bf16.mxu0 %v3726_v54  ;;  %2946 = vmatprep.subr.bf16.mxu1 %v3728_v1 }
 0x38b   :  { %v974_v53 = vpop.f32.mrb[6].mxu0  ;;  %v1045_v6 = vpop.f32.mrb[6].mxu1 }
 0x38c   :  { %v976_v7 = vpop.f32.mrb[7].mxu0  ;;  %v1047_v17 = vpop.f32.mrb[7].mxu1 }
 0x38d   :  { %v1054_v18 = vcombine.low %v974_v53, %v976_v7  ;;  %v1055_v56 = vcombine.low %v1045_v6, %v1047_v17 }
 0x38f   :  { %v1062_v60 = vrot.slane %v1054_v18, %v3684_v57  ;;  %v1069_v3 = vrot.slane %v1055_v56, %v3684_v57 }
 0x391   :  { %v1070_v8 = vcombine.low %v1062_v60, %v1069_v3 }
 0x393   :  { %v1077_v19 = vrot.slane %v1070_v8, %v3684_v57 }
 0x395   :  { %v1079_v30 = vadd.f32 %v1077_v19, %v842_v26  ;;  %v1105_v26 = vld [vmem:[#allocation2 + $0x3] ss:$8 sm:$0xf] }
 0x397   :  { %v2587_v42 = vmul.f32 -1.442695, %v1079_v30  ;;  %v1087_v40 = vrot.slane %v1079_v30, 3 }
 0x399   :  { %3229 = vpow2.f32 %v2587_v42 }
 0x3a3   :  { %v3230_v32 = vpop.eup %3229 }
 0x3a4   :  { %v1083_v39 = vadd.f32 1.0, %v3230_v32 }
 0x3a6   :  { %3231 = vrcp.f32 %v1083_v39 }
 0x3a7   :  { %3233 = vtanh.f32 %v1087_v40 }
 0x3b0   :  { %v3232_v44 = vpop.eup %3231 }
 0x3b1   :  { %v1092_v50 = vrot.slane %v3232_v44, 1  ;;  %v3234_v51 = vpop.eup %3233  ;;  %v1098_v24 = vrot.slane %v3232_v44, 2 }
 0x3b2   :  { %v1095_v10 = vmul.f32 %v3234_v51, %v3232_v44 }
 0x3b3   :  { %v1094_v63 = vmul.f32 %v1092_v50, %v1090_v61 }
 0x3b5   :  { %v1096_v11 = vadd.f32 %v1095_v10, %v1094_v63 }
 0x3b7   :  { %3235 = vtanh.f32 %v1096_v11  ;;  %1101 = vst [vmem:[#allocation5] sm:$0x1] %v1096_v11 }
 0x3be   :  { %v1353_v61 = vld [vmem:[#allocation5] sm:$0x1] }
 0x3c1   :  { %v3236_v34 = vpop.eup %3235 }
 0x3c2   :  { %v1100_v35 = vmul.f32 %v3236_v34, %v1098_v24 }
 0x3c4   :  { %1102 = vst [vmem:[#allocation4] sm:$0x1] %v1100_v35  ;;  %1103 = vst [vmem:[#allocation3 + $0x2] sm:$0x1] %v1100_v35 }
 0x3cb   :  { %v1106_v48 = vld [vmem:[#allocation4] sm:$0x1] }
 0x3cc   :  { %1236 = vmatmul.mubr.f32.vlgmr.msra.gmra.mrb[8].mxu0 %v1106_v48  ;;  %1307 = vmatmul.mubr.f32.vlgmr.msra.gmra.mrb[8].mxu1 %v1106_v48 }
 0x3cd   :  { %2916 = vmatpush1.bf16.msra.mxu0 %v3730_v2  ;;  %2948 = vmatpush1.bf16.msra.mxu1 %v3733_v9 }
 0x3ce   :  { %2918 = vmatprep.subr.bf16.mxu0 %v3738_v20  ;;  %2950 = vmatprep.subr.bf16.mxu1 %v3740_v38 }
 0x3cf   :  { %1498 = vmatprep.mubr.f32.mxu0 %v3433_v0  ;;  %1569 = vmatprep.mubr.f32.mxu1 %v3433_v0 }
 0x3d1   :  { %2920 = vmatpush1.bf16.msra.mxu0 %v3742_v31  ;;  %2952 = vmatpush1.bf16.msra.mxu1 %v3745_v33 }
 0x3d2   :  { %2922 = vmatprep.subr.bf16.mxu0 %v3750_v43  ;;  %2954 = vmatprep.subr.bf16.mxu1 %v3752_v47 }
 0x3d5   :  { %2924 = vmatpush1.bf16.msra.mxu0 %v3754_v49  ;;  %2956 = vmatpush1.bf16.msra.mxu1 %v3757_v55 }
 0x3d6   :  { %2926 = vmatprep.subr.bf16.mxu0 %v3762_v4  ;;  %2958 = vmatprep.subr.bf16.mxu1 %v3764_v16 }
 0x3d9   :  { %2928 = vmatpush1.bf16.msra.mxu0 %v3766_v22  ;;  %2960 = vmatpush1.bf16.msra.mxu1 %v3769_v28 }
 0x3da   :  { %2930 = vmatprep.subr.bf16.mxu0 %v3774_v41  ;;  %2962 = vmatprep.subr.bf16.mxu1 %v3776_v58 }
 0x3dd   :  { %2932 = vmatpush1.bf16.msra.mxu0 %v3778_v5  ;;  %2964 = vmatpush1.bf16.msra.mxu1 %v3781_v13 }
 0x3de   :  { %2934 = vmatprep.subr.bf16.mxu0 %v3786_v59  ;;  %2966 = vmatprep.subr.bf16.mxu1 %v3788_v14 }
 0x3e1   :  { %2936 = vmatpush1.bf16.msra.mxu0 %v3790_v15  ;;  %2968 = vmatpush1.bf16.msra.mxu1 %v3793_v27 }
 0x3e2   :  { %2938 = vmatprep.subr.bf16.mxu0 %v3798_v37  ;;  %2970 = vmatprep.subr.bf16.mxu1 %v3800_v45 }
 0x3e5   :  { %2940 = vmatpush1.bf16.msra.mxu0 %v3802_v46  ;;  %2972 = vmatpush1.bf16.msra.mxu1 %v3805_v62 }
 0x3e6   :  { %2942 = vmatprep.subr.bf16.mxu0 %v3809_v12  ;;  %2974 = vmatprep.subr.bf16.mxu1 %v3811_v23 }
 0x3e9   :  { %2944 = vmatpush1.bf16.msra.mxu0 %v3814_v36  ;;  %2976 = vmatpush1.bf16.msra.mxu1 %v3818_v52 }
 0x3ea   :  { %2978 = vmatprep.subr.bf16.mxu0 %v3726_v54  ;;  %3010 = vmatprep.subr.bf16.mxu1 %v3728_v1 }
 0x49f   :  { %v1237_v53 = vpop.f32.mrb[8].mxu0  ;;  %v1308_v6 = vpop.f32.mrb[8].mxu1 }
 0x4a0   :  { %v1239_v7 = vpop.f32.mrb[9].mxu0  ;;  %v1310_v17 = vpop.f32.mrb[9].mxu1 }
 0x4a1   :  { %v1317_v18 = vcombine.low %v1237_v53, %v1239_v7  ;;  %v1318_v56 = vcombine.low %v1308_v6, %v1310_v17 }
 0x4a3   :  { %v1325_v60 = vrot.slane %v1317_v18, %v3684_v57  ;;  %v1332_v3 = vrot.slane %v1318_v56, %v3684_v57 }
 0x4a5   :  { %v1333_v8 = vcombine.low %v1325_v60, %v1332_v3 }
 0x4a7   :  { %v1340_v19 = vrot.slane %v1333_v8, %v3684_v57 }
 0x4a9   :  { %v1342_v30 = vadd.f32 %v1340_v19, %v1105_v26  ;;  %v1368_v26 = vld [vmem:[#allocation2 + $0x4] ss:$8 sm:$0xf] }
 0x4ab   :  { %v2588_v42 = vmul.f32 -1.442695, %v1342_v30  ;;  %v1350_v40 = vrot.slane %v1342_v30, 3 }
 0x4ad   :  { %3237 = vpow2.f32 %v2588_v42 }
 0x4b7   :  { %v3238_v32 = vpop.eup %3237 }
 0x4b8   :  { %v1346_v39 = vadd.f32 1.0, %v3238_v32 }
 0x4ba   :  { %3239 = vrcp.f32 %v1346_v39 }
 0x4bb   :  { %3241 = vtanh.f32 %v1350_v40 }
 0x4c4   :  { %v3240_v44 = vpop.eup %3239 }
 0x4c5   :  { %v1355_v50 = vrot.slane %v3240_v44, 1  ;;  %v3242_v51 = vpop.eup %3241  ;;  %v1361_v24 = vrot.slane %v3240_v44, 2 }
 0x4c6   :  { %v1358_v10 = vmul.f32 %v3242_v51, %v3240_v44 }
 0x4c7   :  { %v1357_v63 = vmul.f32 %v1355_v50, %v1353_v61 }
 0x4c9   :  { %v1359_v11 = vadd.f32 %v1358_v10, %v1357_v63 }
 0x4cb   :  { %3243 = vtanh.f32 %v1359_v11  ;;  %1364 = vst [vmem:[#allocation5] sm:$0x1] %v1359_v11 }
 0x4d2   :  { %v1616_v50 = vld [vmem:[#allocation5] sm:$0x1] }
 0x4d5   :  { %v3244_v34 = vpop.eup %3243 }
 0x4d6   :  { %v1363_v35 = vmul.f32 %v3244_v34, %v1361_v24 }
 0x4d8   :  { %1365 = vst [vmem:[#allocation4] sm:$0x1] %v1363_v35  ;;  %1366 = vst [vmem:[#allocation3 + $0x3] sm:$0x1] %v1363_v35 }
 0x4df   :  { %v1369_v48 = vld [vmem:[#allocation4] sm:$0x1] }
 0x4e0   :  { %1499 = vmatmul.mubr.f32.vlgmr.msra.gmra.mrb[10].mxu0 %v1369_v48  ;;  %1570 = vmatmul.mubr.f32.vlgmr.msra.gmra.mrb[10].mxu1 %v1369_v48  ;;  %v2166_v48 = vld [vmem:[#allocation11 + $0x38] sm:$0xff] }
 0x4e1   :  { %2980 = vmatpush1.bf16.msra.mxu0 %v3730_v2  ;;  %3012 = vmatpush1.bf16.msra.mxu1 %v3733_v9 }
 0x4e2   :  { %2982 = vmatprep.subr.bf16.mxu0 %v3738_v20  ;;  %3014 = vmatprep.subr.bf16.mxu1 %v3740_v38 }
 0x4e3   :  { %1761 = vmatprep.mubr.f32.mxu0 %v3433_v0  ;;  %1832 = vmatprep.mubr.f32.mxu1 %v3433_v0 }
 0x4e5   :  { %2984 = vmatpush1.bf16.msra.mxu0 %v3742_v31  ;;  %3016 = vmatpush1.bf16.msra.mxu1 %v3745_v33 }
 0x4e6   :  { %2986 = vmatprep.subr.bf16.mxu0 %v3750_v43  ;;  %3018 = vmatprep.subr.bf16.mxu1 %v3752_v47 }
 0x4e9   :  { %2988 = vmatpush1.bf16.msra.mxu0 %v3754_v49  ;;  %3020 = vmatpush1.bf16.msra.mxu1 %v3757_v55 }
 0x4ea   :  { %2990 = vmatprep.subr.bf16.mxu0 %v3762_v4  ;;  %3022 = vmatprep.subr.bf16.mxu1 %v3764_v16 }
 0x4ed   :  { %2992 = vmatpush1.bf16.msra.mxu0 %v3766_v22  ;;  %3024 = vmatpush1.bf16.msra.mxu1 %v3769_v28 }
 0x4ee   :  { %2994 = vmatprep.subr.bf16.mxu0 %v3774_v41  ;;  %3026 = vmatprep.subr.bf16.mxu1 %v3776_v58 }
 0x4f1   :  { %2996 = vmatpush1.bf16.msra.mxu0 %v3778_v5  ;;  %3028 = vmatpush1.bf16.msra.mxu1 %v3781_v13 }
 0x4f2   :  { %2998 = vmatprep.subr.bf16.mxu0 %v3786_v59  ;;  %3030 = vmatprep.subr.bf16.mxu1 %v3788_v14 }
 0x4f5   :  { %3000 = vmatpush1.bf16.msra.mxu0 %v3790_v15  ;;  %3032 = vmatpush1.bf16.msra.mxu1 %v3793_v27 }
 0x4f6   :  { %3002 = vmatprep.subr.bf16.mxu0 %v3798_v37  ;;  %3034 = vmatprep.subr.bf16.mxu1 %v3800_v45 }
 0x4f9   :  { %3004 = vmatpush1.bf16.msra.mxu0 %v3802_v46  ;;  %3036 = vmatpush1.bf16.msra.mxu1 %v3805_v62 }
 0x4fa   :  { %3006 = vmatprep.subr.bf16.mxu0 %v3809_v12  ;;  %3038 = vmatprep.subr.bf16.mxu1 %v3811_v23 }
 0x4fd   :  { %3008 = vmatpush1.bf16.msra.mxu0 %v3814_v36  ;;  %3040 = vmatpush1.bf16.msra.mxu1 %v3818_v52 }
 0x4fe   :  { %3042 = vmatprep.subr.bf16.mxu0 %v3726_v54  ;;  %3074 = vmatprep.subr.bf16.mxu1 %v3728_v1 }
 0x5b3   :  { %v1500_v53 = vpop.f32.mrb[10].mxu0  ;;  %v1571_v6 = vpop.f32.mrb[10].mxu1 }
 0x5b4   :  { %v1502_v7 = vpop.f32.mrb[11].mxu0  ;;  %v1573_v17 = vpop.f32.mrb[11].mxu1 }
 0x5b5   :  { %v1580_v18 = vcombine.low %v1500_v53, %v1502_v7  ;;  %v1581_v56 = vcombine.low %v1571_v6, %v1573_v17  ;;  %v2159_v53 = vld [vmem:[#allocation11] sm:$0xff] }
 0x5b6   :  { %v2163_v6 = vld [vmem:[#allocation11 + $0x20] sm:$0xff] }
 0x5b7   :  { %v1588_v60 = vrot.slane %v1580_v18, %v3684_v57  ;;  %v1595_v3 = vrot.slane %v1581_v56, %v3684_v57  ;;  %v3107_v17 = vpack.c.bf16 %v2163_v6, %v2159_v53  ;;  %v2161_v18 = vld [vmem:[#allocation11 + $0x10] sm:$0xff]  ;;  %v2206_v53 = vld [vmem:[#allocation11 + $0x178] sm:$0xff]  ;;  %v2199_v6 = vld [vmem:[#allocation11 + $0x140] sm:$0xff] }
 0x5b8   :  { %v2165_v56 = vld [vmem:[#allocation11 + $0x30] sm:$0xff] }
 0x5b9   :  { %v1596_v8 = vcombine.low %v1588_v60, %v1595_v3  ;;  %v3139_v60 = vpack.c.bf16 %v2165_v56, %v2161_v18  ;;  %v2168_v3 = vld [vmem:[#allocation11 + $0x48] sm:$0xff]  ;;  %v2201_v56 = vld [vmem:[#allocation11 + $0x150] sm:$0xff] }
 0x5bb   :  { %v1603_v19 = vrot.slane %v1596_v8, %v3684_v57  ;;  %v2172_v8 = vld [vmem:[#allocation11 + $0x68] sm:$0xff] }
 0x5bd   :  { %v1605_v30 = vadd.f32 %v1603_v19, %v1368_v26  ;;  %v2170_v19 = vld [vmem:[#allocation11 + $0x58] sm:$0xff]  ;;  %v3109_v26 = vpack.c.bf16 %v2172_v8, %v2168_v3  ;;  %v2208_v8 = vld [vmem:[#allocation11 + $0x188] sm:$0xff] }
 0x5bf   :  { %v2589_v42 = vmul.f32 -1.442695, %v1605_v30  ;;  %v1613_v1 = vrot.slane %v1605_v30, 3  ;;  %v2174_v30 = vld [vmem:[#allocation11 + $0x78] sm:$0xff] }
 0x5c1   :  { %3245 = vpow2.f32 %v2589_v42  ;;  %v2167_v42 = vld [vmem:[#allocation11 + $0x40] sm:$0xff] }
 0x5cb   :  { %v3246_v54 = vpop.eup %3245 }
 0x5cc   :  { %v1609_v32 = vadd.f32 1.0, %v3246_v54  ;;  %v2171_v54 = vld [vmem:[#allocation11 + $0x60] sm:$0xff] }
 0x5ce   :  { %3247 = vrcp.f32 %v1609_v32  ;;  %v3141_v32 = vpack.c.bf16 %v2174_v30, %v2170_v19  ;;  %v2212_v19 = vld [vmem:[#allocation11 + $0x1a8] sm:$0xff] }
 0x5cf   :  { %3249 = vtanh.f32 %v1613_v1  ;;  %v3111_v1 = vpack.c.bf16 %v2171_v54, %v2167_v42  ;;  %v3129_v30 = vpack.c.bf16 %v2212_v19, %v2208_v8  ;;  %v2214_v42 = vld [vmem:[#allocation11 + $0x1b8] sm:$0xff]  ;;  %v2207_v54 = vld [vmem:[#allocation11 + $0x180] sm:$0xff] }
 0x5d0   :  { %v2424_v19 = vld [vmem:[#allocation12 + $0x20] sm:$0xff] }
 0x5d8   :  { %v3248_v39 = vpop.eup %3247 }
 0x5d9   :  { %v1618_v40 = vrot.slane %v3248_v39, 1  ;;  %v3250_v44 = vpop.eup %3249  ;;  %v1624_v10 = vrot.slane %v3248_v39, 2 }
 0x5da   :  { %v1621_v61 = vmul.f32 %v3250_v44, %v3248_v39  ;;  %v2169_v39 = vld [vmem:[#allocation11 + $0x50] sm:$0xff] }
 0x5db   :  { %v1620_v51 = vmul.f32 %v1618_v40, %v1616_v50  ;;  %v2173_v40 = vld [vmem:[#allocation11 + $0x70] sm:$0xff]  ;;  %v2176_v50 = vld [vmem:[#allocation11 + $0x88] sm:$0xff] }
 0x5dc   :  { %v3143_v44 = vpack.c.bf16 %v2173_v40, %v2169_v39  ;;  %v2209_v40 = vld [vmem:[#allocation11 + $0x190] sm:$0xff] }
 0x5dd   :  { %v1622_v63 = vadd.f32 %v1621_v61, %v1620_v51  ;;  %v2180_v51 = vld [vmem:[#allocation11 + $0xa8] sm:$0xff]  ;;  %v2178_v61 = vld [vmem:[#allocation11 + $0x98] sm:$0xff] }
 0x5df   :  { %3251 = vtanh.f32 %v1622_v63  ;;  %1627 = vst [vmem:[#allocation5] sm:$0x1] %v1622_v63  ;;  %v3113_v63 = vpack.c.bf16 %v2180_v51, %v2176_v50  ;;  %v2216_v50 = vld [vmem:[#allocation11 + $0x1c8] sm:$0xff] }
 0x5e9   :  { %v3252_v11 = vpop.eup %3251 }
 0x5ea   :  { %v1626_v24 = vmul.f32 %v3252_v11, %v1624_v10  ;;  %v2182_v10 = vld [vmem:[#allocation11 + $0xb8] sm:$0xff]  ;;  %v2175_v11 = vld [vmem:[#allocation11 + $0x80] sm:$0xff] }
 0x5ec   :  { %1628 = vst [vmem:[#allocation4] sm:$0x1] %v1626_v24  ;;  %1629 = vst [vmem:[#allocation3 + $0x4] sm:$0x1] %v1626_v24  ;;  %v2179_v24 = vld [vmem:[#allocation11 + $0xa0] sm:$0xff] }
 0x5f3   :  { %v1632_v34 = vld [vmem:[#allocation4] sm:$0x1] }
 0x5f4   :  { %1762 = vmatmul.mubr.f32.vlgmr.msra.gmra.mrb[12].mxu0 %v1632_v34  ;;  %1833 = vmatmul.mubr.f32.vlgmr.msra.gmra.mrb[12].mxu1 %v1632_v34  ;;  %v3145_v34 = vpack.c.bf16 %v2182_v10, %v2178_v61  ;;  %v2220_v61 = vld [vmem:[#allocation11 + $0x1e8] sm:$0xff]  ;;  %v2222_v10 = vld [vmem:[#allocation11 + $0x1f8] sm:$0xff] }
 0x5f5   :  { %3044 = vmatpush1.bf16.msra.mxu0 %v3730_v2  ;;  %3076 = vmatpush1.bf16.msra.mxu1 %v3733_v9 }
 0x5f6   :  { %3046 = vmatprep.subr.bf16.mxu0 %v3738_v20  ;;  %3078 = vmatprep.subr.bf16.mxu1 %v3740_v38 }
 0x5f7   :  { %2024 = vmatprep.mubr.f32.mxu0 %v3433_v0  ;;  %2095 = vmatprep.mubr.f32.mxu1 %v3433_v0 }
 0x5f9   :  { %3048 = vmatpush1.bf16.msra.mxu0 %v3742_v31  ;;  %3080 = vmatpush1.bf16.msra.mxu1 %v3745_v33 }
 0x5fa   :  { %3050 = vmatprep.subr.bf16.mxu0 %v3750_v43  ;;  %3082 = vmatprep.subr.bf16.mxu1 %v3752_v47 }
 0x5fd   :  { %3052 = vmatpush1.bf16.msra.mxu0 %v3754_v49  ;;  %3084 = vmatpush1.bf16.msra.mxu1 %v3757_v55 }
 0x5fe   :  { %3054 = vmatprep.subr.bf16.mxu0 %v3762_v4  ;;  %3086 = vmatprep.subr.bf16.mxu1 %v3764_v16  ;;  %v1631_v4 = vld [vmem:[#allocation2 + $0x5] ss:$8 sm:$0xf] }
 0x601   :  { %3056 = vmatpush1.bf16.msra.mxu0 %v3766_v22  ;;  %3088 = vmatpush1.bf16.msra.mxu1 %v3769_v28 }
 0x602   :  { %3058 = vmatprep.subr.bf16.mxu0 %v3774_v41  ;;  %3090 = vmatprep.subr.bf16.mxu1 %v3776_v58 }
 0x605   :  { %3060 = vmatpush1.bf16.msra.mxu0 %v3778_v5  ;;  %3092 = vmatpush1.bf16.msra.mxu1 %v3781_v13 }
 0x606   :  { %3062 = vmatprep.subr.bf16.mxu0 %v3786_v59  ;;  %3094 = vmatprep.subr.bf16.mxu1 %v3788_v14  ;;  %v1879_v14 = vld [vmem:[#allocation5] sm:$0x1] }
 0x609   :  { %3064 = vmatpush1.bf16.msra.mxu0 %v3790_v15  ;;  %3096 = vmatpush1.bf16.msra.mxu1 %v3793_v27 }
 0x60a   :  { %3066 = vmatprep.subr.bf16.mxu0 %v3798_v37  ;;  %3098 = vmatprep.subr.bf16.mxu1 %v3800_v45 }
 0x60d   :  { %3068 = vmatpush1.bf16.msra.mxu0 %v3802_v46  ;;  %3100 = vmatpush1.bf16.msra.mxu1 %v3805_v62 }
 0x60e   :  { %3070 = vmatprep.subr.bf16.mxu0 %v3809_v12  ;;  %3102 = vmatprep.subr.bf16.mxu1 %v3811_v23  ;;  %v2160_v23 = vld [vmem:[#allocation11 + $0x8] sm:$0xff] }
 0x611   :  { %3072 = vmatpush1.bf16.msra.mxu0 %v3814_v36  ;;  %3104 = vmatpush1.bf16.msra.mxu1 %v3818_v52  ;;  %v2164_v36 = vld [vmem:[#allocation11 + $0x28] sm:$0xff]  ;;  %v2162_v52 = vld [vmem:[#allocation11 + $0x18] sm:$0xff] }
 0x612   :  { %v3105_v35 = vpack.c.bf16 %v2164_v36, %v2160_v23  ;;  %v3137_v7 = vpack.c.bf16 %v2166_v48, %v2162_v52  ;;  %v2200_v36 = vld [vmem:[#allocation11 + $0x148] sm:$0xff] }
 0x613   :  { %v2204_v52 = vld [vmem:[#allocation11 + $0x168] sm:$0xff] }
 0x614   :  { %3106 = vmatprep.subr.bf16.mxu0 %v3105_v35  ;;  %3138 = vmatprep.subr.bf16.mxu1 %v3137_v7  ;;  %v2202_v35 = vld [vmem:[#allocation11 + $0x158] sm:$0xff]  ;;  %v3125_v48 = vpack.c.bf16 %v2204_v52, %v2200_v36  ;;  %v2203_v7 = vld [vmem:[#allocation11 + $0x160] sm:$0xff] }
 0x615   :  { %v3127_v18 = vpack.c.bf16 %v2203_v7, %v2199_v6  ;;  %v2423_v6 = vld [vmem:[#allocation12 + $0x18] sm:$0xff] }
 0x6c7   :  { %v1763_v2 = vpop.f32.mrb[12].mxu0  ;;  %v1834_v9 = vpop.f32.mrb[12].mxu1 }
 0x6c8   :  { %v1765_v20 = vpop.f32.mrb[13].mxu0  ;;  %v1836_v38 = vpop.f32.mrb[13].mxu1 }
 0x6c9   :  { %v1843_v31 = vcombine.low %v1763_v2, %v1765_v20  ;;  %v1844_v33 = vcombine.low %v1834_v9, %v1836_v38  ;;  %v3115_v2 = vpack.c.bf16 %v2179_v24, %v2175_v11  ;;  %v2177_v9 = vld [vmem:[#allocation11 + $0x90] sm:$0xff]  ;;  %v3133_v11 = vpack.c.bf16 %v2220_v61, %v2216_v50 }
 0x6ca   :  { %v2181_v20 = vld [vmem:[#allocation11 + $0xb0] sm:$0xff] }
 0x6cb   :  { %v1851_v43 = vrot.slane %v1843_v31, %v3684_v57  ;;  %v1858_v47 = vrot.slane %v1844_v33, %v3684_v57  ;;  %v3147_v38 = vpack.c.bf16 %v2181_v20, %v2177_v9  ;;  %v2184_v31 = vld [vmem:[#allocation11 + $0xc8] sm:$0xff]  ;;  %v2217_v9 = vld [vmem:[#allocation11 + $0x1d0] sm:$0xff] }
 0x6cc   :  { %v2188_v33 = vld [vmem:[#allocation11 + $0xe8] sm:$0xff]  ;;  %v2434_v61 = vld [vmem:[#allocation12 + $0x70] sm:$0xff] }
 0x6cd   :  { %v1859_v49 = vcombine.low %v1851_v43, %v1858_v47  ;;  %v2186_v43 = vld [vmem:[#allocation11 + $0xd8] sm:$0xff]  ;;  %v3117_v47 = vpack.c.bf16 %v2188_v33, %v2184_v31 }
 0x6cf   :  { %v1866_v55 = vrot.slane %v1859_v49, %v3684_v57  ;;  %v2190_v49 = vld [vmem:[#allocation11 + $0xf8] sm:$0xff] }
 0x6d1   :  { %v1868_v16 = vadd.f32 %v1866_v55, %v1631_v4  ;;  %v2183_v55 = vld [vmem:[#allocation11 + $0xc0] sm:$0xff] }
 0x6d2   :  { %v2187_v4 = vld [vmem:[#allocation11 + $0xe0] sm:$0xff] }
 0x6d3   :  { %v2590_v22 = vmul.f32 -1.442695, %v1868_v16  ;;  %v1876_v58 = vrot.slane %v1868_v16, 3  ;;  %v3149_v16 = vpack.c.bf16 %v2190_v49, %v2186_v43 }
 0x6d5   :  { %3253 = vpow2.f32 %v2590_v22  ;;  %v3119_v22 = vpack.c.bf16 %v2187_v4, %v2183_v55 }
 0x6df   :  { %v3254_v28 = vpop.eup %3253 }
 0x6e0   :  { %v1872_v41 = vadd.f32 1.0, %v3254_v28  ;;  %v2185_v28 = vld [vmem:[#allocation11 + $0xd0] sm:$0xff] }
 0x6e2   :  { %3255 = vrcp.f32 %v1872_v41  ;;  %v2189_v41 = vld [vmem:[#allocation11 + $0xf0] sm:$0xff] }
 0x6e3   :  { %3257 = vtanh.f32 %v1876_v58  ;;  %v3151_v58 = vpack.c.bf16 %v2189_v41, %v2185_v28 }
 0x6ec   :  { %v3256_v5 = vpop.eup %3255 }
 0x6ed   :  { %v1881_v13 = vrot.slane %v3256_v5, 1  ;;  %v3258_v59 = vpop.eup %3257  ;;  %v1887_v45 = vrot.slane %v3256_v5, 2 }
 0x6ee   :  { %v1884_v27 = vmul.f32 %v3258_v59, %v3256_v5  ;;  %v2192_v5 = vld [vmem:[#allocation11 + $0x108] sm:$0xff]  ;;  %v2194_v59 = vld [vmem:[#allocation11 + $0x118] sm:$0xff] }
 0x6ef   :  { %v1883_v15 = vmul.f32 %v1881_v13, %v1879_v14  ;;  %v2196_v13 = vld [vmem:[#allocation11 + $0x128] sm:$0xff] }
 0x6f0   :  { %v3121_v14 = vpack.c.bf16 %v2196_v13, %v2192_v5 }
 0x6f1   :  { %v1885_v37 = vadd.f32 %v1884_v27, %v1883_v15  ;;  %v2198_v15 = vld [vmem:[#allocation11 + $0x138] sm:$0xff]  ;;  %v2191_v27 = vld [vmem:[#allocation11 + $0x100] sm:$0xff] }
 0x6f3   :  { %3259 = vtanh.f32 %v1885_v37  ;;  %1890 = vst [vmem:[#allocation5] sm:$0x1] %v1885_v37  ;;  %v2195_v37 = vld [vmem:[#allocation11 + $0x120] sm:$0xff] }
 0x6fd   :  { %v3260_v46 = vpop.eup %3259 }
 0x6fe   :  { %v1889_v62 = vmul.f32 %v3260_v46, %v1887_v45  ;;  %v3153_v45 = vpack.c.bf16 %v2198_v15, %v2194_v59  ;;  %v3123_v46 = vpack.c.bf16 %v2195_v37, %v2191_v27 }
 0x700   :  { %1891 = vst [vmem:[#allocation4] sm:$0x1] %v1889_v62  ;;  %1892 = vst [vmem:[#allocation3 + $0x5] sm:$0x1] %v1889_v62  ;;  %v2193_v62 = vld [vmem:[#allocation11 + $0x110] sm:$0xff] }
 0x707   :  { %v1895_v12 = vld [vmem:[#allocation4] sm:$0x1] }
 0x708   :  { %2025 = vmatmul.mubr.f32.vlgmr.msra.gmra.mrb[14].mxu0 %v1895_v12  ;;  %2096 = vmatmul.mubr.f32.vlgmr.msra.gmra.mrb[14].mxu1 %v1895_v12  ;;  %v2197_v12 = vld [vmem:[#allocation11 + $0x130] sm:$0xff] }
 0x709   :  { %2287 = vmatprep.mubr.f32.mxu0 %v3433_v0  ;;  %2358 = vmatprep.mubr.f32.mxu1 %v3433_v0  ;;  %v3155_v23 = vpack.c.bf16 %v2197_v12, %v2193_v62 }
 0x70a   :  { %3108 = vmatpush1.bf16.msra.mxu0 %v3107_v17  ;;  %3140 = vmatpush1.bf16.msra.mxu1 %v3139_v60  ;;  %v3157_v17 = vpack.c.bf16 %v2206_v53, %v2202_v35  ;;  %v2205_v60 = vld [vmem:[#allocation11 + $0x170] sm:$0xff]  ;;  %v2421_v53 = vld [vmem:[#allocation12 + $0x8] sm:$0xff] }
 0x70b   :  { %3110 = vmatprep.subr.bf16.mxu0 %v3109_v26  ;;  %3142 = vmatprep.subr.bf16.mxu1 %v3141_v32  ;;  %v3159_v3 = vpack.c.bf16 %v2205_v60, %v2201_v56  ;;  %v2210_v26 = vld [vmem:[#allocation11 + $0x198] sm:$0xff]  ;;  %v2211_v32 = vld [vmem:[#allocation11 + $0x1a0] sm:$0xff]  ;;  %v3169_v7 = vpack.c.bf16 %v2423_v6, %v2421_v53  ;;  %v2425_v60 = vld [vmem:[#allocation12 + $0x28] sm:$0xff] }
 0x70c   :  { %v3131_v39 = vpack.c.bf16 %v2211_v32, %v2207_v54  ;;  %v2431_v54 = vld [vmem:[#allocation12 + $0x58] sm:$0xff] }
 0x70e   :  { %3112 = vmatpush1.bf16.msra.mxu0 %v3111_v1  ;;  %3144 = vmatpush1.bf16.msra.mxu1 %v3143_v44  ;;  %v3161_v1 = vpack.c.bf16 %v2214_v42, %v2210_v26  ;;  %v2213_v44 = vld [vmem:[#allocation11 + $0x1b0] sm:$0xff]  ;;  %v2429_v42 = vld [vmem:[#allocation12 + $0x48] sm:$0xff] }
 0x70f   :  { %3114 = vmatprep.subr.bf16.mxu0 %v3113_v63  ;;  %3146 = vmatprep.subr.bf16.mxu1 %v3145_v34  ;;  %v3163_v51 = vpack.c.bf16 %v2213_v44, %v2209_v40  ;;  %v2218_v63 = vld [vmem:[#allocation11 + $0x1d8] sm:$0xff]  ;;  %v2215_v34 = vld [vmem:[#allocation11 + $0x1c0] sm:$0xff]  ;;  %v2426_v26 = vld [vmem:[#allocation12 + $0x30] sm:$0xff]  ;;  %v3177_v32 = vpack.c.bf16 %v2431_v54, %v2429_v42 }
 0x710   :  { %v3165_v24 = vpack.c.bf16 %v2222_v10, %v2218_v63  ;;  %v2433_v40 = vld [vmem:[#allocation12 + $0x68] sm:$0xff]  ;;  %v2435_v44 = vld [vmem:[#allocation12 + $0x78] sm:$0xff] }
 0x711   :  { %v3181_v50 = vpack.c.bf16 %v2435_v44, %v2433_v40  ;;  %v2437_v10 = vld [vmem:[#allocation12 + $0x88] sm:$0xff] }
 0x712   :  { %3116 = vmatpush1.bf16.msra.mxu0 %v3115_v2  ;;  %3148 = vmatpush1.bf16.msra.mxu1 %v3147_v38  ;;  %v2219_v2 = vld [vmem:[#allocation11 + $0x1e0] sm:$0xff]  ;;  %v2221_v38 = vld [vmem:[#allocation11 + $0x1f0] sm:$0xff] }
 0x713   :  { %3118 = vmatprep.subr.bf16.mxu0 %v3117_v47  ;;  %3150 = vmatprep.subr.bf16.mxu1 %v3149_v16  ;;  %v3135_v20 = vpack.c.bf16 %v2219_v2, %v2215_v34  ;;  %v3167_v31 = vpack.c.bf16 %v2221_v38, %v2217_v9  ;;  %v2436_v34 = vld [vmem:[#allocation12 + $0x80] sm:$0xff]  ;;  %v2438_v2 = vld [vmem:[#allocation12 + $0x90] sm:$0xff]  ;;  %v2443_v38 = vld [vmem:[#allocation12 + $0xb8] sm:$0xff] }
 0x714   :  { %v3187_v9 = vpack.c.bf16 %v2438_v2, %v2436_v34 }
 0x716   :  { %3120 = vmatpush1.bf16.msra.mxu0 %v3119_v22  ;;  %3152 = vmatpush1.bf16.msra.mxu1 %v3151_v58  ;;  %v1894_v58 = vld [vmem:[#allocation2 + $0x6] ss:$8 sm:$0xf] }
 0x717   :  { %3122 = vmatprep.subr.bf16.mxu0 %v3121_v14  ;;  %3154 = vmatprep.subr.bf16.mxu1 %v3153_v45 }
 0x71a   :  { %3124 = vmatpush1.bf16.msra.mxu0 %v3123_v46  ;;  %3156 = vmatpush1.bf16.msra.mxu1 %v3155_v23  ;;  %v2142_v46 = vld [vmem:[#allocation5] sm:$0x1] }
 0x71b   :  { %3126 = vmatprep.subr.bf16.mxu0 %v3125_v48  ;;  %3158 = vmatprep.subr.bf16.mxu1 %v3157_v17  ;;  %v2420_v17 = vld [vmem:[#allocation12] sm:$0xff] }
 0x71e   :  { %3128 = vmatpush1.bf16.msra.mxu0 %v3127_v18  ;;  %3160 = vmatpush1.bf16.msra.mxu1 %v3159_v3  ;;  %v2422_v18 = vld [vmem:[#allocation12 + $0x10] sm:$0xff]  ;;  %v2427_v3 = vld [vmem:[#allocation12 + $0x38] sm:$0xff] }
 0x71f   :  { %3130 = vmatprep.subr.bf16.mxu0 %v3129_v30  ;;  %3162 = vmatprep.subr.bf16.mxu1 %v3161_v1  ;;  %v3171_v56 = vpack.c.bf16 %v2422_v18, %v2420_v17  ;;  %v3173_v8 = vpack.c.bf16 %v2427_v3, %v2425_v60  ;;  %v3175_v30 = vpack.c.bf16 %v2426_v26, %v2424_v19  ;;  %v2430_v1 = vld [vmem:[#allocation12 + $0x50] sm:$0xff] }
 0x722   :  { %3132 = vmatpush1.bf16.msra.mxu0 %v3131_v39  ;;  %3164 = vmatpush1.bf16.msra.mxu1 %v3163_v51  ;;  %v2432_v51 = vld [vmem:[#allocation12 + $0x60] sm:$0xff] }
 0x723   :  { %3134 = vmatprep.subr.bf16.mxu0 %v3133_v11  ;;  %3166 = vmatprep.subr.bf16.mxu1 %v3165_v24  ;;  %v3183_v63 = vpack.c.bf16 %v2434_v61, %v2432_v51  ;;  %v2439_v11 = vld [vmem:[#allocation12 + $0x98] sm:$0xff] }
 0x724   :  { %v3185_v24 = vpack.c.bf16 %v2439_v11, %v2437_v10 }
 0x726   :  { %3136 = vmatpush1.bf16.msra.mxu0 %v3135_v20  ;;  %3168 = vmatpush1.bf16.msra.mxu1 %v3167_v31  ;;  %v2441_v20 = vld [vmem:[#allocation12 + $0xa8] sm:$0xff] }
 0x727   :  { %3170 = vmatprep.subr.bf16.mxu0 %v3169_v7  ;;  %v3189_v31 = vpack.c.bf16 %v2443_v38, %v2441_v20 }
 0x7db   :  { %v2026_v33 = vpop.f32.mrb[14].mxu0  ;;  %v2097_v43 = vpop.f32.mrb[14].mxu1 }
 0x7dc   :  { %v2028_v47 = vpop.f32.mrb[15].mxu0  ;;  %v2099_v49 = vpop.f32.mrb[15].mxu1 }
 0x7dd   :  { %v2106_v55 = vcombine.low %v2026_v33, %v2028_v47  ;;  %v2107_v4 = vcombine.low %v2097_v43, %v2099_v49  ;;  %v2440_v33 = vld [vmem:[#allocation12 + $0xa0] sm:$0xff]  ;;  %v2442_v43 = vld [vmem:[#allocation12 + $0xb0] sm:$0xff]  ;;  %v2445_v49 = vld [vmem:[#allocation12 + $0xc8] sm:$0xff] }
 0x7de   :  { %v3191_v47 = vpack.c.bf16 %v2442_v43, %v2440_v33 }
 0x7df   :  { %v2114_v16 = vrot.slane %v2106_v55, %v3684_v57  ;;  %v2121_v22 = vrot.slane %v2107_v4, %v3684_v57  ;;  %v2447_v55 = vld [vmem:[#allocation12 + $0xd8] sm:$0xff]  ;;  %v2444_v4 = vld [vmem:[#allocation12 + $0xc0] sm:$0xff] }
 0x7e1   :  { %v2122_v28 = vcombine.low %v2114_v16, %v2121_v22  ;;  %v3193_v16 = vpack.c.bf16 %v2447_v55, %v2445_v49  ;;  %v2446_v22 = vld [vmem:[#allocation12 + $0xd0] sm:$0xff] }
 0x7e3   :  { %v2129_v41 = vrot.slane %v2122_v28, %v3684_v57  ;;  %v2449_v28 = vld [vmem:[#allocation12 + $0xe8] sm:$0xff] }
 0x7e5   :  { %v2131_v5 = vadd.f32 %v2129_v41, %v1894_v58  ;;  %v2451_v41 = vld [vmem:[#allocation12 + $0xf8] sm:$0xff]  ;;  %v3195_v58 = vpack.c.bf16 %v2446_v22, %v2444_v4 }
 0x7e7   :  { %v2591_v13 = vmul.f32 -1.442695, %v2131_v5  ;;  %v2139_v15 = vrot.slane %v2131_v5, 3  ;;  %v3197_v5 = vpack.c.bf16 %v2451_v41, %v2449_v28 }
 0x7e9   :  { %3261 = vpow2.f32 %v2591_v13  ;;  %v2448_v13 = vld [vmem:[#allocation12 + $0xe0] sm:$0xff] }
 0x7f3   :  { %v3262_v59 = vpop.eup %3261 }
 0x7f4   :  { %v2135_v14 = vadd.f32 1.0, %v3262_v59  ;;  %v2450_v59 = vld [vmem:[#allocation12 + $0xf0] sm:$0xff] }
 0x7f6   :  { %3263 = vrcp.f32 %v2135_v14  ;;  %v3199_v14 = vpack.c.bf16 %v2450_v59, %v2448_v13 }
 0x7f7   :  { %3265 = vtanh.f32 %v2139_v15 }
 0x800   :  { %v3264_v27 = vpop.eup %3263 }
 0x801   :  { %v2144_v37 = vrot.slane %v3264_v27, 1  ;;  %v3266_v45 = vpop.eup %3265  ;;  %v2150_v36 = vrot.slane %v3264_v27, 2 }
 0x802   :  { %v2147_v12 = vmul.f32 %v3266_v45, %v3264_v27 }
 0x803   :  { %v2146_v62 = vmul.f32 %v2144_v37, %v2142_v46 }
 0x805   :  { %v2148_v23 = vadd.f32 %v2147_v12, %v2146_v62 }
 0x807   :  { %3267 = vtanh.f32 %v2148_v23  ;;  %2153 = vst [vmem:[#allocation5] sm:$0x1] %v2148_v23 }
 0x80e   :  { %v2405_v3 = vld [vmem:[#allocation5] sm:$0x1] }
 0x811   :  { %v3268_v52 = vpop.eup %3267 }
 0x812   :  { %v2152_v35 = vmul.f32 %v3268_v52, %v2150_v36 }
 0x814   :  { %2154 = vst [vmem:[#allocation4] sm:$0x1] %v2152_v35  ;;  %2155 = vst [vmem:[#allocation3 + $0x6] sm:$0x1] %v2152_v35 }
 0x815   :  { %v2157_v35 = vld [vmem:[#allocation2 + $0x7] ss:$8 sm:$0xf] }
 0x81b   :  { %v2158_v48 = vld [vmem:[#allocation4] sm:$0x1] }
 0x81c   :  { %2288 = vmatmul.mubr.f32.vlgmr.msra.gmra.mrb[16].mxu0 %v2158_v48  ;;  %2359 = vmatmul.mubr.f32.vlgmr.msra.gmra.mrb[16].mxu1 %v2158_v48 }
 0x81d   :  { %2528 = vmatprep.mubr.f32.mxu0 %v3433_v0  ;;  %3172 = vmatpush1.bf16.msra.mxu0 %v3171_v56  ;;  %v2428_v0 = vld [vmem:[#allocation12 + $0x40] sm:$0xff] }
 0x81e   :  { %3174 = vmatprep.subr.bf16.mxu0 %v3173_v8  ;;  %v3179_v39 = vpack.c.bf16 %v2430_v1, %v2428_v0 }
 0x821   :  { %3176 = vmatpush1.bf16.msra.mxu0 %v3175_v30 }
 0x822   :  { %3178 = vmatprep.subr.bf16.mxu0 %v3177_v32  ;;  %v2452_v32 = vld [vmem:[%s3981_s5] sm:$0x3]  ;;  %s3435_s5 = smov [#allocation14]  }
 0x823   :  { %v2457_v0 = vrot.slane %v2452_v32, %v149_v25  ;;  %v2461_v1 = vrot.slane %v2452_v32, %v153_v29  ;;  %s2560_s28 = sshll.u32 %s3435_s5, 4  ;;  %s2561_s28 = int_to_ptr.vmem [resolvable:$true] %s2560_s28 }
 0x824   :  { %s3371_s29 = scalar_lea.vmem %s2561_s28, 256  ;;  %p3376_p5 = scmp.lt.s32.totalorder %s2561_s28, %s2561_s28 }
 0x825   :  { %3180 = vmatpush1.bf16.msra.mxu0 %v3179_v39  ;;  %p3372_p4 = scmp.ne.s32.totalorder %s2561_s28, %s3371_s29  ;;  %p3377_p6 = scmp.lt.s32.totalorder %s3371_s29, %s3371_s29 }
 0x826   :  { %3182 = vmatprep.subr.bf16.mxu0 %v3181_v50 }
 0x827   :  { %p3378_p7 = por %p3377_p6, %p3376_p5 }
 0x829   :  { %3184 = vmatpush1.bf16.msra.mxu0 %v3183_v63  ;;  %p3379_p8 = pnand %p3378_p7, %p3372_p4 }
 0x82a   :  { %3186 = vmatprep.subr.bf16.mxu0 %v3185_v24 }
 0x82d   :  { %3188 = vmatpush1.bf16.msra.mxu0 %v3187_v9 }
 0x82e   :  { %3190 = vmatprep.subr.bf16.mxu0 %v3189_v31 }
 0x831   :  { %3192 = vmatpush1.bf16.msra.mxu0 %v3191_v47 }
 0x832   :  { %3194 = vmatprep.subr.bf16.mxu0 %v3193_v16 }
 0x835   :  { %3196 = vmatpush1.bf16.msra.mxu0 %v3195_v58 }
 0x836   :  { %3198 = vmatprep.subr.bf16.mxu0 %v3197_v5 }
 0x839   :  { %3200 = vmatpush1.bf16.msra.mxu0 %v3199_v14 }
 0x8ef   :  { %v2289_v15 = vpop.f32.mrb[16].mxu0  ;;  %v2360_v27 = vpop.f32.mrb[16].mxu1 }
 0x8f0   :  { %v2291_v37 = vpop.f32.mrb[17].mxu0  ;;  %v2362_v45 = vpop.f32.mrb[17].mxu1 }
 0x8f1   :  { %v2369_v46 = vcombine.low %v2289_v15, %v2291_v37  ;;  %v2370_v62 = vcombine.low %v2360_v27, %v2362_v45 }
 0x8f3   :  { %v2377_v12 = vrot.slane %v2369_v46, %v3684_v57  ;;  %v2384_v23 = vrot.slane %v2370_v62, %v3684_v57 }
 0x8f5   :  { %v2385_v36 = vcombine.low %v2377_v12, %v2384_v23 }
 0x8f7   :  { %v2392_v52 = vrot.slane %v2385_v36, %v3684_v57 }
 0x8f9   :  { %v2394_v48 = vadd.f32 %v2392_v52, %v2157_v35 }
 0x8fb   :  { %v2592_v53 = vmul.f32 -1.442695, %v2394_v48  ;;  %v2402_v17 = vrot.slane %v2394_v48, 3 }
 0x8fd   :  { %3269 = vpow2.f32 %v2592_v53 }
 0x907   :  { %v3270_v6 = vpop.eup %3269 }
 0x908   :  { %v2398_v7 = vadd.f32 1.0, %v3270_v6 }
 0x90a   :  { %3271 = vrcp.f32 %v2398_v7 }
 0x90b   :  { %3273 = vtanh.f32 %v2402_v17 }
 0x914   :  { %v3272_v18 = vpop.eup %3271 }
 0x915   :  { %v2407_v56 = vrot.slane %v3272_v18, 1  ;;  %v3274_v60 = vpop.eup %3273  ;;  %v2413_v30 = vrot.slane %v3272_v18, 2 }
 0x916   :  { %v2410_v19 = vmul.f32 %v3274_v60, %v3272_v18 }
 0x917   :  { %v2409_v8 = vmul.f32 %v2407_v56, %v2405_v3 }
 0x919   :  { %v2411_v26 = vadd.f32 %v2410_v19, %v2409_v8 }
 0x91b   :  { %3275 = vtanh.f32 %v2411_v26  ;;  %2416 = vst [vmem:[#allocation5] sm:$0x1] %v2411_v26 }
 0x925   :  { %v3276_v57 = vpop.eup %3275 }
 0x926   :  { %v2415_v42 = vmul.f32 %v3276_v57, %v2413_v30 }
 0x928   :  { %2417 = vst [vmem:[#allocation4] sm:$0x1] %v2415_v42  ;;  %2418 = vst [vmem:[#allocation3 + $0x7] sm:$0x1] %v2415_v42 }
 0x92f   :  { %v2419_v54 = vld [vmem:[#allocation3] sm:$0xff] }
 0x930   :  { %2529 = vmatmul.mubr.f32.vlgmr.msra.gmra.mrb[18].mxu0 %v2419_v54 }
 0xa03   :  { %v2530_v39 = vpop.f32.mrb[18].mxu0 }
 0xa04   :  { %v2531_v40 = vadd.f32 %v2530_v39, %v2457_v0  ;;  %v2532_v44 = vpop.f32.mrb[19].mxu0 }
 0xa05   :  { %v2533_v50 = vadd.f32 %v2532_v44, %v2461_v1 }
 0xa06   :  { %2535 = vst [vmem:[#allocation14] sm:$0xff] %v2531_v40 }
 0xa07   :  { %2536 = vst [vmem:[#allocation14 + $0x8] sm:$0xff] %v2533_v50  ;;  %v2537_v51 = vmax.f32 %v2531_v40, %v2533_v50 }
 0xa09   :  { %2538 = vmax.xlane.f32.xlu0 %v2537_v51 }
 0xa96   :  { %v2539_v61 = vpop.xlane.xlu0 %2538 }
 0xa97   :  { %v2540_v63 = vsub.f32 %v2531_v40, %v2539_v61  ;;  %v2541_v10 = vsub.f32 %v2533_v50, %v2539_v61 }
 0xa99   :  { %v2542_v11 = vmul.f32 1.442695, %v2540_v63  ;;  %v2544_v24 = vmul.f32 1.442695, %v2541_v10 }
 0xa9b   :  { %3277 = vpow2.f32 %v2542_v11 }
 0xa9c   :  { %3279 = vpow2.f32 %v2544_v24 }
 0xaa5   :  { %v3278_v34 = vpop.eup %3277 }
 0xaa6   :  { %v3280_v25 = vpop.eup %3279 }
 0xaa7   :  { %v2546_v2 = vadd.f32 %v3280_v25, %v3278_v34 }
 0xaa9   :  { %2547 = vadd.xlane.f32.xlu0 %v2546_v2 }
 0xaaa   :  { %3382 = shalt.err (!%p3379_p8)
}
 0xaab   :  { %s3383_s9 = scalar_lea.hbm %s3982_s6, 256 }
 0xaac   :  { %p3384_p9 = scmp.ne.s32.totalorder %s3982_s6, %s3383_s9  ;;  %p3387_p10 = scmp.lt.u32.totalorder %s3383_s9, %s3982_s6 }
 0xaae   :  { %p3389_p11 = pnand %p3387_p10, %p3384_p9 }
 0xab0   :  { %3392 = shalt.err (!%p3389_p11)
}
 0xab1   :  { %2563 = dma.vmem_to_hbm [thread:$0]  %s2561_s28, 256, %s3982_s6, [#allocation8]  }
 0xab2   :  { %s3436_s17 = smov [#allocation15]  }
 0xab3   :  { %s2570_s19 = sshll.u32 %s3436_s17, 4  ;;  %s2571_s19 = int_to_ptr.vmem [resolvable:$true] %s2570_s19 }
 0xab4   :  { %s3393_s20 = scalar_lea.vmem %s2571_s19, 256  ;;  %p3398_p13 = scmp.lt.s32.totalorder %s2571_s19, %s2571_s19 }
 0xab5   :  { %p3394_p12 = scmp.ne.s32.totalorder %s2571_s19, %s3393_s20  ;;  %p3399_p0 = scmp.lt.s32.totalorder %s3393_s20, %s3393_s20 }
 0xab7   :  { %p3400_p1 = por %p3399_p0, %p3398_p13 }
 0xab9   :  { %p3401_p2 = pnand %p3400_p1, %p3394_p12 }
 0xb36   :  { %v2548_v21 = vpop.xlane.xlu0 %2547 }
 0xb37   :  { %3281 = vrcp.f32 %v2548_v21 }
 0xb41   :  { %v3282_v29 = vpop.eup %3281 }
 0xb42   :  { %v2550_v9 = vmul.f32 %v3282_v29, %v3278_v34  ;;  %v2551_v20 = vmul.f32 %v3282_v29, %v3280_v25 }
 0xb44   :  { %2552 = vst [vmem:[#allocation15] sm:$0xff] %v2550_v9  ;;  %2553 = vst [vmem:[#allocation15 + $0x8] sm:$0xff] %v2551_v20 }
 0xb45   :  { %3404 = shalt.err (!%p3401_p2)
}
 0xb46   :  { %s3405_s6 = scalar_lea.hbm %s3983_s7, 256 }
 0xb47   :  { %p3406_p3 = scmp.ne.s32.totalorder %s3983_s7, %s3405_s6  ;;  %p3409_p4 = scmp.lt.u32.totalorder %s3405_s6, %s3983_s7 }
 0xb49   :  { %p3411_p5 = pnand %p3409_p4, %p3406_p3 }
 0xb4b   :  { %3414 = shalt.err (!%p3411_p5)
}
 0xb4c   :  { %2573 = dma.vmem_to_hbm [thread:$0]  %s2571_s19, 256, %s3983_s7, [#allocation16]  }
 0xb4d   :  { %3421 = dma.done.wait [#allocation8], 256  }
 0xb4e   :  { %3422 = vsyncadd [#allocation8], 4294967040 }
 0xb4f   :  { %3423 = dma.done.wait [#allocation16], 256  }
 0xb50   :  { %3424 = vsyncadd [#allocation16], 4294967040 }
 0xb51   :  { %2580 = vsyncpa [#allocation7], 1 }
 0xb52   :  { %2581 = vsyncpa [#allocation10], 1 }
 0xb53   :  { %2582 = vsyncpa [#allocation13], 1 }
 0xb54   :  { %2583 = vsyncpa [#allocation8], 1 }
 0xb55   :  { %2584 = vsyncpa [#allocation16], 1 }

</bundles_post_ra>
